<compile_context>
chip_gen: v7x
topology: tpu7x:2x2x1
jax: 0.10.0
libtpu: 0.0.40
codegen_flags: <defaults>
</compile_context>

<pallas_src>
import jax
import jax.numpy as jnp
from jax import lax
from jax.experimental import pallas as pl
from jax.experimental.pallas import tpu as pltpu

_LANE = 128


# ---------------------------------------------------------------------------
# Fused two-stage SepConv kernel
# ---------------------------------------------------------------------------
def _sepconv_fused_kernel(ph_ref, wf1_ref, b1_ref, wf2_ref, b2_ref,
                          out_ref, acc_ref, y1pad_ref):
    # ph_ref   : (1, 4*Hph, Wph, Cin) bf16  zero-padded input, 2x2 phase-decomposed;
    #            phase p = 2*row_parity + col_parity occupies rows [p*Hph,(p+1)*Hph).
    # wf1_ref  : (9, Cin, Cmid_p)     bf16  fused dw1 (x) pw1 * bn1_scale, per tap
    # b1_ref   : (1, Cmid_p)          f32   folded bn1 bias
    # wf2_ref  : (9, Cmid_p, Cout_p)  bf16  fused dw2 (x) pw2 * bn2_scale, per tap
    # b2_ref   : (1, Cout_p)          f32   folded bn2 bias
    # out_ref  : (1, Ho*Wo, Cout_p)   f32
    # acc_ref  : (Ho*Wo, max(Cmid_p, Cout_p)) f32 scratch, shared by both stages
    # y1pad_ref: (Ho+2, Wo+2, Cmid_p) bf16 scratch -- stage-1 act with zero halo
    hph = ph_ref.shape[1] // 4
    cin = ph_ref.shape[3]
    cmid = y1pad_ref.shape[2]
    cout = out_ref.shape[2]
    ho = y1pad_ref.shape[0] - 2
    wo = y1pad_ref.shape[1] - 2
    hw = ho * wo

    # ---- stage 1: dw 3x3 s2 + pw 1x1 + BN + ReLU as 9 accumulated matmuls ----
    for ki in range(3):
        for kj in range(3):
            t = ki * 3 + kj
            p = 2 * (ki % 2) + (kj % 2)          # which stride-2 phase
            r0 = p * hph + ki // 2               # row offset inside that phase
            c0 = kj // 2                         # col offset inside that phase
            slab = ph_ref[0, r0:r0 + ho, c0:c0 + wo, :].reshape(hw, cin)
            contrib = jnp.dot(slab, wf1_ref[t],
                              preferred_element_type=jnp.float32)
            if t == 0:
                acc_ref[:, :cmid] = contrib      # first tap overwrites: no zero pass
            else:
                acc_ref[:, :cmid] += contrib
    y1 = jnp.maximum(acc_ref[:, :cmid] + b1_ref[...], 0.0)   # f32 epilogue

    # ---- stage-1 activation -> zero-halo VMEM scratch (one interior store) ----
    zdt = y1pad_ref.dtype
    zrow = jnp.zeros((1, wo + 2, cmid), zdt)
    zcol = jnp.zeros((ho + 2, 1, cmid), zdt)
    y1pad_ref[0:1, :, :] = zrow                   # only the halo ring needs zeros;
    y1pad_ref[ho + 1:ho + 2, :, :] = zrow         # the interior is fully rewritten
    y1pad_ref[:, 0:1, :] = zcol
    y1pad_ref[:, wo + 1:wo + 2, :] = zcol
    y1pad_ref[1:ho + 1, 1:wo + 1, :] = y1.reshape(ho, wo, cmid).astype(zdt)

    # ---- stage 2: dw 3x3 s1 + pw 1x1 + BN + ReLU as 9 accumulated matmuls ----
    for ki in range(3):
        for kj in range(3):
            t = ki * 3 + kj
            slab = y1pad_ref[ki:ki + ho, kj:kj + wo, :].reshape(hw, cmid)
            contrib = jnp.dot(slab, wf2_ref[t],
                              preferred_element_type=jnp.float32)
            if t == 0:
                acc_ref[:, :cout] = contrib
            else:
                acc_ref[:, :cout] += contrib
    y2 = jnp.maximum(acc_ref[:, :cout] + b2_ref[...], 0.0)   # f32 epilogue
    out_ref[0] = y2.astype(out_ref.dtype)                    # lane-dense store


# ---------------------------------------------------------------------------
# Glue: phase decomposition (absorbs the stride-2), padding, wrapper
# ---------------------------------------------------------------------------
def _round_up(x, m):
    return (x + m - 1) // m * m


def _pad_to(a, axis, size):
    if a.shape[axis] == size:
        return a
    pads = [(0, 0)] * a.ndim
    pads[axis] = (0, size - a.shape[axis])
    return jnp.pad(a, pads)


def _phase_decompose(x_nhwc, pad):
    """Zero-pad and split into the four stride-2 phases, folded along rows.

    Returns (N, 4*Hph, Wph, C); phase p = 2*row_parity + col_parity lives in rows
    [p*Hph, (p+1)*Hph). A partition of the padded input (~1x bytes), not a
    per-tap copy.
    """
    n, h, w, c = x_nhwc.shape
    hp = h + 2 * pad
    wp = w + 2 * pad
    hp += hp % 2                      # make even so all four phases share a shape
    wp += wp % 2
    xp = jnp.pad(x_nhwc, ((0, 0), (pad, hp - h - pad), (pad, wp - w - pad), (0, 0)))
    phases = jnp.stack(
        [xp[:, 0::2, 0::2, :], xp[:, 0::2, 1::2, :],
         xp[:, 1::2, 0::2, :], xp[:, 1::2, 1::2, :]], axis=1)  # (N,4,hp/2,wp/2,C)
    hph, wph = hp // 2, wp // 2
    return phases.reshape(n, 4 * hph, wph, c), hph, wph


def _vmem_tile_bytes(shape, itemsize):
    """Per-buffer VMEM footprint estimate (last dim lane-padded to 128, 2nd-last to 8)."""
    dims = list(shape)
    dims[-1] = _round_up(dims[-1], 128)
    if len(dims) >= 2:
        dims[-2] = _round_up(dims[-2], 8)
    sz = itemsize
    for d in dims:
        sz *= d
    return sz


def sepconv_forward(x_nchw, params, *, compute_dtype=jnp.bfloat16):
    """Full SepConv forward (eval-mode BN). Input/output are NCHW like PyTorch."""
    ksize, stride, pad = 3, 2, 1
    x = jnp.transpose(x_nchw, (0, 2, 3, 1)).astype(compute_dtype)   # NCHW -> NHWC
    n, h, w, cin = x.shape
    cmid = params["wf1"].shape[2]            # stage-1 out channels (= channel_in)
    cout = params["wf2"].shape[2]            # stage-2 out channels
    cmid_p = _round_up(cmid, _LANE)
    cout_p = _round_up(cout, _LANE)
    maxc = max(cmid_p, cout_p)
    ho = (h + 2 * pad - ksize) // stride + 1
    wo = (w + 2 * pad - ksize) // stride + 1
    hw = ho * wo

    phases, hph, wph = _phase_decompose(x, pad)

    # Pad ONLY the output-channel dims of weights/biases (lane-dense stores);
    # the HBM activation input keeps its true channel count.
    wf1 = _pad_to(params["wf1"], 2, cmid_p).astype(compute_dtype)              # (9,Cin,Cmid_p)
    b1 = _pad_to(params["b1"], 1, cmid_p).astype(jnp.float32)                  # (1,Cmid_p)
    wf2 = _pad_to(_pad_to(params["wf2"], 1, cmid_p), 2, cout_p).astype(compute_dtype)  # (9,Cmid_p,Cout_p)
    b2 = _pad_to(params["b2"], 1, cout_p).astype(jnp.float32)                  # (1,Cout_p)

    # Explicit VMEM limit from the actual (double-buffered) blocks + scratch.
    cb = 2 if compute_dtype in (jnp.bfloat16, jnp.float16) else 4
    est = 2 * (_vmem_tile_bytes((1, 4 * hph, wph, cin), cb)
               + _vmem_tile_bytes((9, cin, cmid_p), cb)
               + _vmem_tile_bytes((1, cmid_p), 4)
               + _vmem_tile_bytes((9, cmid_p, cout_p), cb)
               + _vmem_tile_bytes((1, cout_p), 4)
               + _vmem_tile_bytes((1, hw, cout_p), 4))
    est += _vmem_tile_bytes((hw, maxc), 4) + _vmem_tile_bytes((ho + 2, wo + 2, cmid_p), cb)
    vmem_limit = int(min(max(2 * est + (4 << 20), 32 << 20), 100 << 20))

    out = pl.pallas_call(
        _sepconv_fused_kernel,
        out_shape=jax.ShapeDtypeStruct((n, hw, cout_p), jnp.float32),
        grid=(n,),
        in_specs=[
            pl.BlockSpec((1, 4 * hph, wph, cin), lambda b: (b, 0, 0, 0)),
            pl.BlockSpec((9, cin, cmid_p), lambda b: (0, 0, 0)),
            pl.BlockSpec((1, cmid_p), lambda b: (0, 0)),
            pl.BlockSpec((9, cmid_p, cout_p), lambda b: (0, 0, 0)),
            pl.BlockSpec((1, cout_p), lambda b: (0, 0)),
        ],
        out_specs=pl.BlockSpec((1, hw, cout_p), lambda b: (b, 0, 0)),
        scratch_shapes=[
            pltpu.VMEM((hw, maxc), jnp.float32),                   # shared f32 accumulator
            pltpu.VMEM((ho + 2, wo + 2, cmid_p), compute_dtype),   # stage-1 act + zero halo
        ],
        compiler_params=pltpu.CompilerParams(
            dimension_semantics=("parallel",),
            vmem_limit_bytes=vmem_limit),
    )(phases, wf1, b1, wf2, b2)

    out = out[:, :, :cout].reshape(n, ho, wo, cout)                # drop channel padding
    return jnp.transpose(out, (0, 3, 1, 2)).astype(x_nchw.dtype)   # NHWC -> NCHW


# ---------------------------------------------------------------------------
# Weight fusion (dw x pw x BN-scale) and parameter init
# ---------------------------------------------------------------------------
def _fold_bn(gamma, beta, mean, var, eps=1e-5):
    scale = gamma / jnp.sqrt(var + eps)
    return scale, beta - mean * scale


def _fuse_stage(dw_t, pw_t, bn_scale, bn_bias):
    """Fuse torch-layout depthwise (C,1,k,k) + pointwise (Cout,Cin,1,1) + BN scale
    into per-tap matmul weights (k*k, Cin, Cout) and a (1, Cout) bias."""
    cin, _, kh, kw = dw_t.shape
    cout = pw_t.shape[0]
    wdw = jnp.transpose(dw_t.reshape(cin, kh * kw), (1, 0))        # (k2, Cin)
    wpw = jnp.transpose(pw_t[:, :, 0, 0], (1, 0))                  # (Cin, Cout)
    wpw_scaled = wpw * bn_scale[None, :]                           # fold BN scale
    wf = wdw[:, :, None] * wpw_scaled[None, :, :]                  # (k2, Cin, Cout)
    return wf.astype(jnp.float32), bn_bias.reshape(1, cout).astype(jnp.float32)


def init_params(key, channel_in, channel_out, ksize=3, eps=1e-5):
    ks = jax.random.split(key, 8)
    dw1_t = 0.1 * jax.random.normal(ks[0], (channel_in, 1, ksize, ksize), jnp.float32)
    dw2_t = 0.1 * jax.random.normal(ks[1], (channel_in, 1, ksize, ksize), jnp.float32)
    pw1_t = 0.1 * jax.random.normal(ks[2], (channel_in, channel_in, 1, 1), jnp.float32)
    pw2_t = 0.1 * jax.random.normal(ks[3], (channel_out, channel_in, 1, 1), jnp.float32)

    # BatchNorm (affine) folded with running_mean=0 / running_var=1 (eval mode).
    g1 = 1.0 + 0.1 * jax.random.normal(ks[4], (channel_in,), jnp.float32)
    b1 = 0.1 * jax.random.normal(ks[5], (channel_in,), jnp.float32)
    g2 = 1.0 + 0.1 * jax.random.normal(ks[6], (channel_out,), jnp.float32)
    b2 = 0.1 * jax.random.normal(ks[7], (channel_out,), jnp.float32)
    scale1, bias1 = _fold_bn(g1, b1, jnp.zeros((channel_in,), jnp.float32),
                             jnp.ones((channel_in,), jnp.float32), eps)
    scale2, bias2 = _fold_bn(g2, b2, jnp.zeros((channel_out,), jnp.float32),
                             jnp.ones((channel_out,), jnp.float32), eps)

    wf1, bvec1 = _fuse_stage(dw1_t, pw1_t, scale1, bias1)
    wf2, bvec2 = _fuse_stage(dw2_t, pw2_t, scale2, bias2)

    params = dict(wf1=wf1, b1=bvec1, wf2=wf2, b2=bvec2)
    torch_weights = dict(dw1=dw1_t, pw1=pw1_t, dw2=dw2_t, pw2=pw2_t,
                         scale1=scale1, bias1=bias1, scale2=scale2, bias2=bias2)
    return params, torch_weights


# ---------------------------------------------------------------------------
# Pure-JAX f32 reference (lax.conv) to validate the Pallas path
# ---------------------------------------------------------------------------
def _ref_forward(x_nchw, tw):
    dn = ("NHWC", "HWIO", "NHWC")
    x = jnp.transpose(x_nchw, (0, 2, 3, 1))
    c_in = x.shape[-1]

    def dw(x, w_t, stride):
        w = jnp.transpose(w_t, (2, 3, 1, 0))  # (k,k,1,C)
        return lax.conv_general_dilated(x, w, (stride, stride), [(1, 1), (1, 1)],
                                        dimension_numbers=dn,
                                        feature_group_count=c_in)

    def pw(x, w_t):
        w = jnp.transpose(w_t, (2, 3, 1, 0))  # (1,1,Cin,Cout)
        return lax.conv_general_dilated(x, w, (1, 1), [(0, 0), (0, 0)],
                                        dimension_numbers=dn)

    y = dw(x, tw["dw1"], 2)
    y = pw(y, tw["pw1"])
    y = jnp.maximum(y * tw["scale1"] + tw["bias1"], 0.0)
    y = dw(y, tw["dw2"], 1)
    y = pw(y, tw["pw2"])
    y = jnp.maximum(y * tw["scale2"] + tw["bias2"], 0.0)
    return jnp.transpose(y, (0, 3, 1, 2))


# ---------------------------------------------------------------------------
if __name__ == "__main__":
    key = jax.random.PRNGKey(0)
    k_x, k_p = jax.random.split(key)

    N, C_IN, H, W = 2, 4, 16, 16
    C_OUT = 8

    x = jax.random.normal(k_x, (N, C_IN, H, W), jnp.float32)
    params, torch_w = init_params(k_p, C_IN, C_OUT)

    fwd = jax.jit(sepconv_forward)
    out = jax.block_until_ready(fwd(x, params))
    assert out.shape == (N, C_OUT, H // 2, W // 2), out.shape

    ref = jax.block_until_ready(_ref_forward(x, torch_w))
    # Kernel uses bf16 operands with f32 accumulation -> compare against the
    # pure-f32 reference at a bf16-appropriate tolerance.
    if not jnp.allclose(out, ref, rtol=2e-2, atol=2e-2):
        raise AssertionError("Pallas SepConv does not match reference")

    print("KERNEL_OK")
</pallas_src>

<mosaic_0001>
module attributes {stable_mosaic.version = 11 : i64} {
  func.func @_sepconv_fused_kernel(%arg0: i32, %arg1: memref<1x36x9x4xbf16, #tpu.memory_space<vmem>>, %arg2: memref<9x4x128xbf16, #tpu.memory_space<vmem>>, %arg3: memref<1x128xf32, #tpu.memory_space<vmem>>, %arg4: memref<9x128x128xbf16, #tpu.memory_space<vmem>>, %arg5: memref<1x128xf32, #tpu.memory_space<vmem>>, %arg6: memref<1x64x128xf32, #tpu.memory_space<vmem>>, %arg7: memref<64x128xf32, #tpu.memory_space<vmem>>, %arg8: memref<10x10x128xbf16, #tpu.memory_space<vmem>>) attributes {dimension_semantics = [#tpu.dimension_semantics<parallel>], iteration_bounds = array<i64: 2>, scalar_prefetch = 0 : i64, scratch_operands = 2 : i64, tpu.core_type = #tpu.core_type<tc>, window_params = [{transform_indices = @transform_0, window_bounds = array<i64: 1, 36, 9, 4>}, {pipeline_mode = #tpu.pipeline_mode<synchronous>, transform_indices = @transform_1, window_bounds = array<i64: 9, 4, 128>}, {pipeline_mode = #tpu.pipeline_mode<synchronous>, transform_indices = @transform_2, window_bounds = array<i64: 1, 128>}, {pipeline_mode = #tpu.pipeline_mode<synchronous>, transform_indices = @transform_3, window_bounds = array<i64: 9, 128, 128>}, {pipeline_mode = #tpu.pipeline_mode<synchronous>, transform_indices = @transform_4, window_bounds = array<i64: 1, 128>}, {transform_indices = @transform_5, window_bounds = array<i64: 1, 64, 128>}]} {
    %c0 = arith.constant 0 : index
    %c0_0 = arith.constant 0 : index
    %c0_1 = arith.constant 0 : index
    %c0_2 = arith.constant 0 : index
    %0 = vector.load %arg1[%c0, %c0_0, %c0_1, %c0_2] : memref<1x36x9x4xbf16, #tpu.memory_space<vmem>>, vector<1x8x8x4xbf16>
    %1 = vector.shape_cast %0 : vector<1x8x8x4xbf16> to vector<8x8x4xbf16>
    %2 = vector.shape_cast %1 : vector<8x8x4xbf16> to vector<64x4xbf16>
    %c0_3 = arith.constant 0 : index
    %c0_4 = arith.constant 0 : index
    %c0_5 = arith.constant 0 : index
    %3 = vector.load %arg2[%c0_3, %c0_4, %c0_5] : memref<9x4x128xbf16, #tpu.memory_space<vmem>>, vector<1x4x128xbf16>
    %4 = vector.shape_cast %3 : vector<1x4x128xbf16> to vector<4x128xbf16>
    %cst = arith.constant dense<0.000000e+00> : vector<64x128xf32>
    %5 = tpu.matmul %2, %4, %cst {dimension_numbers = #tpu.dot_dimension_numbers<[1], [0], [0], [1], [0, 0, 1, 1], [], []>} : vector<64x4xbf16>, vector<4x128xbf16>, vector<64x128xf32> -> vector<64x128xf32>
    %c0_6 = arith.constant 0 : index
    %c0_7 = arith.constant 0 : index
    %6 = vector.load %arg7[%c0_6, %c0_7] : memref<64x128xf32, #tpu.memory_space<vmem>>, vector<64x128xf32>
    tpu.vector_store %arg7[%c0_6, %c0_7], %5 {strides = array<i32>} : memref<64x128xf32, #tpu.memory_space<vmem>>, vector<64x128xf32>,
    %c0_8 = arith.constant 0 : index
    %c9 = arith.constant 9 : index
    %c0_9 = arith.constant 0 : index
    %c0_10 = arith.constant 0 : index
    %7 = vector.load %arg1[%c0_8, %c9, %c0_9, %c0_10] : memref<1x36x9x4xbf16, #tpu.memory_space<vmem>>, vector<1x8x8x4xbf16>
    %8 = vector.shape_cast %7 : vector<1x8x8x4xbf16> to vector<8x8x4xbf16>
    %9 = vector.shape_cast %8 : vector<8x8x4xbf16> to vector<64x4xbf16>
    %c1 = arith.constant 1 : index
    %c0_11 = arith.constant 0 : index
    %c0_12 = arith.constant 0 : index
    %10 = vector.load %arg2[%c1, %c0_11, %c0_12] : memref<9x4x128xbf16, #tpu.memory_space<vmem>>, vector<1x4x128xbf16>
    %11 = vector.shape_cast %10 : vector<1x4x128xbf16> to vector<4x128xbf16>
    %cst_13 = arith.constant dense<0.000000e+00> : vector<64x128xf32>
    %12 = tpu.matmul %9, %11, %cst_13 {dimension_numbers = #tpu.dot_dimension_numbers<[1], [0], [0], [1], [0, 0, 1, 1], [], []>} : vector<64x4xbf16>, vector<4x128xbf16>, vector<64x128xf32> -> vector<64x128xf32>
    %c0_14 = arith.constant 0 : index
    %c0_15 = arith.constant 0 : index
    %13 = vector.load %arg7[%c0_14, %c0_15] : memref<64x128xf32, #tpu.memory_space<vmem>>, vector<64x128xf32>
    %14 = arith.addf %13, %12 : vector<64x128xf32>
    %c0_16 = arith.constant 0 : index
    %c0_17 = arith.constant 0 : index
    %15 = vector.load %arg7[%c0_16, %c0_17] : memref<64x128xf32, #tpu.memory_space<vmem>>, vector<64x128xf32>
    tpu.vector_store %arg7[%c0_16, %c0_17], %14 {strides = array<i32>} : memref<64x128xf32, #tpu.memory_space<vmem>>, vector<64x128xf32>,
    %c0_18 = arith.constant 0 : index
    %c0_19 = arith.constant 0 : index
    %c1_20 = arith.constant 1 : index
    %c0_21 = arith.constant 0 : index
    %16 = vector.load %arg1[%c0_18, %c0_19, %c1_20, %c0_21] : memref<1x36x9x4xbf16, #tpu.memory_space<vmem>>, vector<1x8x8x4xbf16>
    %17 = vector.shape_cast %16 : vector<1x8x8x4xbf16> to vector<8x8x4xbf16>
    %18 = vector.shape_cast %17 : vector<8x8x4xbf16> to vector<64x4xbf16>
    %c2 = arith.constant 2 : index
    %c0_22 = arith.constant 0 : index
    %c0_23 = arith.constant 0 : index
    %19 = vector.load %arg2[%c2, %c0_22, %c0_23] : memref<9x4x128xbf16, #tpu.memory_space<vmem>>, vector<1x4x128xbf16>
    %20 = vector.shape_cast %19 : vector<1x4x128xbf16> to vector<4x128xbf16>
    %cst_24 = arith.constant dense<0.000000e+00> : vector<64x128xf32>
    %21 = tpu.matmul %18, %20, %cst_24 {dimension_numbers = #tpu.dot_dimension_numbers<[1], [0], [0], [1], [0, 0, 1, 1], [], []>} : vector<64x4xbf16>, vector<4x128xbf16>, vector<64x128xf32> -> vector<64x128xf32>
    %c0_25 = arith.constant 0 : index
    %c0_26 = arith.constant 0 : index
    %22 = vector.load %arg7[%c0_25, %c0_26] : memref<64x128xf32, #tpu.memory_space<vmem>>, vector<64x128xf32>
    %23 = arith.addf %22, %21 : vector<64x128xf32>
    %c0_27 = arith.constant 0 : index
    %c0_28 = arith.constant 0 : index
    %24 = vector.load %arg7[%c0_27, %c0_28] : memref<64x128xf32, #tpu.memory_space<vmem>>, vector<64x128xf32>
    tpu.vector_store %arg7[%c0_27, %c0_28], %23 {strides = array<i32>} : memref<64x128xf32, #tpu.memory_space<vmem>>, vector<64x128xf32>,
    %c0_29 = arith.constant 0 : index
    %c18 = arith.constant 18 : index
    %c0_30 = arith.constant 0 : index
    %c0_31 = arith.constant 0 : index
    %25 = vector.load %arg1[%c0_29, %c18, %c0_30, %c0_31] : memref<1x36x9x4xbf16, #tpu.memory_space<vmem>>, vector<1x8x8x4xbf16>
    %26 = vector.shape_cast %25 : vector<1x8x8x4xbf16> to vector<8x8x4xbf16>
    %27 = vector.shape_cast %26 : vector<8x8x4xbf16> to vector<64x4xbf16>
    %c3 = arith.constant 3 : index
    %c0_32 = arith.constant 0 : index
    %c0_33 = arith.constant 0 : index
    %28 = vector.load %arg2[%c3, %c0_32, %c0_33] : memref<9x4x128xbf16, #tpu.memory_space<vmem>>, vector<1x4x128xbf16>
    %29 = vector.shape_cast %28 : vector<1x4x128xbf16> to vector<4x128xbf16>
    %cst_34 = arith.constant dense<0.000000e+00> : vector<64x128xf32>
    %30 = tpu.matmul %27, %29, %cst_34 {dimension_numbers = #tpu.dot_dimension_numbers<[1], [0], [0], [1], [0, 0, 1, 1], [], []>} : vector<64x4xbf16>, vector<4x128xbf16>, vector<64x128xf32> -> vector<64x128xf32>
    %c0_35 = arith.constant 0 : index
    %c0_36 = arith.constant 0 : index
    %31 = vector.load %arg7[%c0_35, %c0_36] : memref<64x128xf32, #tpu.memory_space<vmem>>, vector<64x128xf32>
    %32 = arith.addf %31, %30 : vector<64x128xf32>
    %c0_37 = arith.constant 0 : index
    %c0_38 = arith.constant 0 : index
    %33 = vector.load %arg7[%c0_37, %c0_38] : memref<64x128xf32, #tpu.memory_space<vmem>>, vector<64x128xf32>
    tpu.vector_store %arg7[%c0_37, %c0_38], %32 {strides = array<i32>} : memref<64x128xf32, #tpu.memory_space<vmem>>, vector<64x128xf32>,
    %c0_39 = arith.constant 0 : index
    %c27 = arith.constant 27 : index
    %c0_40 = arith.constant 0 : index
    %c0_41 = arith.constant 0 : index
    %34 = vector.load %arg1[%c0_39, %c27, %c0_40, %c0_41] : memref<1x36x9x4xbf16, #tpu.memory_space<vmem>>, vector<1x8x8x4xbf16>
    %35 = vector.shape_cast %34 : vector<1x8x8x4xbf16> to vector<8x8x4xbf16>
    %36 = vector.shape_cast %35 : vector<8x8x4xbf16> to vector<64x4xbf16>
    %c4 = arith.constant 4 : index
    %c0_42 = arith.constant 0 : index
    %c0_43 = arith.constant 0 : index
    %37 = vector.load %arg2[%c4, %c0_42, %c0_43] : memref<9x4x128xbf16, #tpu.memory_space<vmem>>, vector<1x4x128xbf16>
    %38 = vector.shape_cast %37 : vector<1x4x128xbf16> to vector<4x128xbf16>
    %cst_44 = arith.constant dense<0.000000e+00> : vector<64x128xf32>
    %39 = tpu.matmul %36, %38, %cst_44 {dimension_numbers = #tpu.dot_dimension_numbers<[1], [0], [0], [1], [0, 0, 1, 1], [], []>} : vector<64x4xbf16>, vector<4x128xbf16>, vector<64x128xf32> -> vector<64x128xf32>
    %c0_45 = arith.constant 0 : index
    %c0_46 = arith.constant 0 : index
    %40 = vector.load %arg7[%c0_45, %c0_46] : memref<64x128xf32, #tpu.memory_space<vmem>>, vector<64x128xf32>
    %41 = arith.addf %40, %39 : vector<64x128xf32>
    %c0_47 = arith.constant 0 : index
    %c0_48 = arith.constant 0 : index
    %42 = vector.load %arg7[%c0_47, %c0_48] : memref<64x128xf32, #tpu.memory_space<vmem>>, vector<64x128xf32>
    tpu.vector_store %arg7[%c0_47, %c0_48], %41 {strides = array<i32>} : memref<64x128xf32, #tpu.memory_space<vmem>>, vector<64x128xf32>,
    %c0_49 = arith.constant 0 : index
    %c18_50 = arith.constant 18 : index
    %c1_51 = arith.constant 1 : index
    %c0_52 = arith.constant 0 : index
    %43 = vector.load %arg1[%c0_49, %c18_50, %c1_51, %c0_52] : memref<1x36x9x4xbf16, #tpu.memory_space<vmem>>, vector<1x8x8x4xbf16>
    %44 = vector.shape_cast %43 : vector<1x8x8x4xbf16> to vector<8x8x4xbf16>
    %45 = vector.shape_cast %44 : vector<8x8x4xbf16> to vector<64x4xbf16>
    %c5 = arith.constant 5 : index
    %c0_53 = arith.constant 0 : index
    %c0_54 = arith.constant 0 : index
    %46 = vector.load %arg2[%c5, %c0_53, %c0_54] : memref<9x4x128xbf16, #tpu.memory_space<vmem>>, vector<1x4x128xbf16>
    %47 = vector.shape_cast %46 : vector<1x4x128xbf16> to vector<4x128xbf16>
    %cst_55 = arith.constant dense<0.000000e+00> : vector<64x128xf32>
    %48 = tpu.matmul %45, %47, %cst_55 {dimension_numbers = #tpu.dot_dimension_numbers<[1], [0], [0], [1], [0, 0, 1, 1], [], []>} : vector<64x4xbf16>, vector<4x128xbf16>, vector<64x128xf32> -> vector<64x128xf32>
    %c0_56 = arith.constant 0 : index
    %c0_57 = arith.constant 0 : index
    %49 = vector.load %arg7[%c0_56, %c0_57] : memref<64x128xf32, #tpu.memory_space<vmem>>, vector<64x128xf32>
    %50 = arith.addf %49, %48 : vector<64x128xf32>
    %c0_58 = arith.constant 0 : index
    %c0_59 = arith.constant 0 : index
    %51 = vector.load %arg7[%c0_58, %c0_59] : memref<64x128xf32, #tpu.memory_space<vmem>>, vector<64x128xf32>
    tpu.vector_store %arg7[%c0_58, %c0_59], %50 {strides = array<i32>} : memref<64x128xf32, #tpu.memory_space<vmem>>, vector<64x128xf32>,
    %c0_60 = arith.constant 0 : index
    %c1_61 = arith.constant 1 : index
    %c0_62 = arith.constant 0 : index
    %c0_63 = arith.constant 0 : index
    %52 = vector.load %arg1[%c0_60, %c1_61, %c0_62, %c0_63] : memref<1x36x9x4xbf16, #tpu.memory_space<vmem>>, vector<1x8x8x4xbf16>
    %53 = vector.shape_cast %52 : vector<1x8x8x4xbf16> to vector<8x8x4xbf16>
    %54 = vector.shape_cast %53 : vector<8x8x4xbf16> to vector<64x4xbf16>
    %c6 = arith.constant 6 : index
    %c0_64 = arith.constant 0 : index
    %c0_65 = arith.constant 0 : index
    %55 = vector.load %arg2[%c6, %c0_64, %c0_65] : memref<9x4x128xbf16, #tpu.memory_space<vmem>>, vector<1x4x128xbf16>
    %56 = vector.shape_cast %55 : vector<1x4x128xbf16> to vector<4x128xbf16>
    %cst_66 = arith.constant dense<0.000000e+00> : vector<64x128xf32>
    %57 = tpu.matmul %54, %56, %cst_66 {dimension_numbers = #tpu.dot_dimension_numbers<[1], [0], [0], [1], [0, 0, 1, 1], [], []>} : vector<64x4xbf16>, vector<4x128xbf16>, vector<64x128xf32> -> vector<64x128xf32>
    %c0_67 = arith.constant 0 : index
    %c0_68 = arith.constant 0 : index
    %58 = vector.load %arg7[%c0_67, %c0_68] : memref<64x128xf32, #tpu.memory_space<vmem>>, vector<64x128xf32>
    %59 = arith.addf %58, %57 : vector<64x128xf32>
    %c0_69 = arith.constant 0 : index
    %c0_70 = arith.constant 0 : index
    %60 = vector.load %arg7[%c0_69, %c0_70] : memref<64x128xf32, #tpu.memory_space<vmem>>, vector<64x128xf32>
    tpu.vector_store %arg7[%c0_69, %c0_70], %59 {strides = array<i32>} : memref<64x128xf32, #tpu.memory_space<vmem>>, vector<64x128xf32>,
    %c0_71 = arith.constant 0 : index
    %c10 = arith.constant 10 : index
    %c0_72 = arith.constant 0 : index
    %c0_73 = arith.constant 0 : index
    %61 = vector.load %arg1[%c0_71, %c10, %c0_72, %c0_73] : memref<1x36x9x4xbf16, #tpu.memory_space<vmem>>, vector<1x8x8x4xbf16>
    %62 = vector.shape_cast %61 : vector<1x8x8x4xbf16> to vector<8x8x4xbf16>
    %63 = vector.shape_cast %62 : vector<8x8x4xbf16> to vector<64x4xbf16>
    %c7 = arith.constant 7 : index
    %c0_74 = arith.constant 0 : index
    %c0_75 = arith.constant 0 : index
    %64 = vector.load %arg2[%c7, %c0_74, %c0_75] : memref<9x4x128xbf16, #tpu.memory_space<vmem>>, vector<1x4x128xbf16>
    %65 = vector.shape_cast %64 : vector<1x4x128xbf16> to vector<4x128xbf16>
    %cst_76 = arith.constant dense<0.000000e+00> : vector<64x128xf32>
    %66 = tpu.matmul %63, %65, %cst_76 {dimension_numbers = #tpu.dot_dimension_numbers<[1], [0], [0], [1], [0, 0, 1, 1], [], []>} : vector<64x4xbf16>, vector<4x128xbf16>, vector<64x128xf32> -> vector<64x128xf32>
    %c0_77 = arith.constant 0 : index
    %c0_78 = arith.constant 0 : index
    %67 = vector.load %arg7[%c0_77, %c0_78] : memref<64x128xf32, #tpu.memory_space<vmem>>, vector<64x128xf32>
    %68 = arith.addf %67, %66 : vector<64x128xf32>
    %c0_79 = arith.constant 0 : index
    %c0_80 = arith.constant 0 : index
    %69 = vector.load %arg7[%c0_79, %c0_80] : memref<64x128xf32, #tpu.memory_space<vmem>>, vector<64x128xf32>
    tpu.vector_store %arg7[%c0_79, %c0_80], %68 {strides = array<i32>} : memref<64x128xf32, #tpu.memory_space<vmem>>, vector<64x128xf32>,
    %c0_81 = arith.constant 0 : index
    %c1_82 = arith.constant 1 : index
    %c1_83 = arith.constant 1 : index
    %c0_84 = arith.constant 0 : index
    %70 = vector.load %arg1[%c0_81, %c1_82, %c1_83, %c0_84] : memref<1x36x9x4xbf16, #tpu.memory_space<vmem>>, vector<1x8x8x4xbf16>
    %71 = vector.shape_cast %70 : vector<1x8x8x4xbf16> to vector<8x8x4xbf16>
    %72 = vector.shape_cast %71 : vector<8x8x4xbf16> to vector<64x4xbf16>
    %c8 = arith.constant 8 : index
    %c0_85 = arith.constant 0 : index
    %c0_86 = arith.constant 0 : index
    %73 = vector.load %arg2[%c8, %c0_85, %c0_86] : memref<9x4x128xbf16, #tpu.memory_space<vmem>>, vector<1x4x128xbf16>
    %74 = vector.shape_cast %73 : vector<1x4x128xbf16> to vector<4x128xbf16>
    %cst_87 = arith.constant dense<0.000000e+00> : vector<64x128xf32>
    %75 = tpu.matmul %72, %74, %cst_87 {dimension_numbers = #tpu.dot_dimension_numbers<[1], [0], [0], [1], [0, 0, 1, 1], [], []>} : vector<64x4xbf16>, vector<4x128xbf16>, vector<64x128xf32> -> vector<64x128xf32>
    %c0_88 = arith.constant 0 : index
    %c0_89 = arith.constant 0 : index
    %76 = vector.load %arg7[%c0_88, %c0_89] : memref<64x128xf32, #tpu.memory_space<vmem>>, vector<64x128xf32>
    %77 = arith.addf %76, %75 : vector<64x128xf32>
    %c0_90 = arith.constant 0 : index
    %c0_91 = arith.constant 0 : index
    %78 = vector.load %arg7[%c0_90, %c0_91] : memref<64x128xf32, #tpu.memory_space<vmem>>, vector<64x128xf32>
    tpu.vector_store %arg7[%c0_90, %c0_91], %77 {strides = array<i32>} : memref<64x128xf32, #tpu.memory_space<vmem>>, vector<64x128xf32>,
    %c0_92 = arith.constant 0 : index
    %c0_93 = arith.constant 0 : index
    %79 = vector.load %arg7[%c0_92, %c0_93] : memref<64x128xf32, #tpu.memory_space<vmem>>, vector<64x128xf32>
    %c0_94 = arith.constant 0 : index
    %c0_95 = arith.constant 0 : index
    %80 = vector.load %arg3[%c0_94, %c0_95] : memref<1x128xf32, #tpu.memory_space<vmem>>, vector<1x128xf32>
    %81 = vector.broadcast %80 : vector<1x128xf32> to vector<64x128xf32>
    %82 = arith.addf %79, %81 : vector<64x128xf32>
    %cst_96 = arith.constant 0.000000e+00 : f32
    %83 = vector.broadcast %cst_96 : f32 to vector<64x128xf32>
    %84 = arith.maximumf %82, %83 : vector<64x128xf32>
    %cst_97 = arith.constant 0.000000e+00 : bf16
    %85 = vector.broadcast %cst_97 : bf16 to vector<1x10x128xbf16>
    %cst_98 = arith.constant 0.000000e+00 : bf16
    %86 = vector.broadcast %cst_98 : bf16 to vector<10x1x128xbf16>
    %c0_99 = arith.constant 0 : index
    %c0_100 = arith.constant 0 : index
    %c0_101 = arith.constant 0 : index
    %87 = vector.load %arg8[%c0_99, %c0_100, %c0_101] : memref<10x10x128xbf16, #tpu.memory_space<vmem>>, vector<1x10x128xbf16>
    tpu.vector_store %arg8[%c0_99, %c0_100, %c0_101], %85 {strides = array<i32>} : memref<10x10x128xbf16, #tpu.memory_space<vmem>>, vector<1x10x128xbf16>,
    %c9_102 = arith.constant 9 : index
    %c0_103 = arith.constant 0 : index
    %c0_104 = arith.constant 0 : index
    %88 = vector.load %arg8[%c9_102, %c0_103, %c0_104] : memref<10x10x128xbf16, #tpu.memory_space<vmem>>, vector<1x10x128xbf16>
    tpu.vector_store %arg8[%c9_102, %c0_103, %c0_104], %85 {strides = array<i32>} : memref<10x10x128xbf16, #tpu.memory_space<vmem>>, vector<1x10x128xbf16>,
    %c0_105 = arith.constant 0 : index
    %c0_106 = arith.constant 0 : index
    %c0_107 = arith.constant 0 : index
    %89 = vector.load %arg8[%c0_105, %c0_106, %c0_107] : memref<10x10x128xbf16, #tpu.memory_space<vmem>>, vector<10x1x128xbf16>
    tpu.vector_store %arg8[%c0_105, %c0_106, %c0_107], %86 {strides = array<i32>} : memref<10x10x128xbf16, #tpu.memory_space<vmem>>, vector<10x1x128xbf16>,
    %c0_108 = arith.constant 0 : index
    %c9_109 = arith.constant 9 : index
    %c0_110 = arith.constant 0 : index
    %90 = vector.load %arg8[%c0_108, %c9_109, %c0_110] : memref<10x10x128xbf16, #tpu.memory_space<vmem>>, vector<10x1x128xbf16>
    tpu.vector_store %arg8[%c0_108, %c9_109, %c0_110], %86 {strides = array<i32>} : memref<10x10x128xbf16, #tpu.memory_space<vmem>>, vector<10x1x128xbf16>,
    %91 = vector.shape_cast %84 : vector<64x128xf32> to vector<8x8x128xf32>
    %92 = arith.truncf %91 : vector<8x8x128xf32> to vector<8x8x128xbf16>
    %c1_111 = arith.constant 1 : index
    %c1_112 = arith.constant 1 : index
    %c0_113 = arith.constant 0 : index
    %93 = vector.load %arg8[%c1_111, %c1_112, %c0_113] : memref<10x10x128xbf16, #tpu.memory_space<vmem>>, vector<8x8x128xbf16>
    tpu.vector_store %arg8[%c1_111, %c1_112, %c0_113], %92 {strides = array<i32>} : memref<10x10x128xbf16, #tpu.memory_space<vmem>>, vector<8x8x128xbf16>,
    %c0_114 = arith.constant 0 : index
    %c0_115 = arith.constant 0 : index
    %c0_116 = arith.constant 0 : index
    %94 = vector.load %arg8[%c0_114, %c0_115, %c0_116] : memref<10x10x128xbf16, #tpu.memory_space<vmem>>, vector<8x8x128xbf16>
    %95 = vector.shape_cast %94 : vector<8x8x128xbf16> to vector<64x128xbf16>
    %c0_117 = arith.constant 0 : index
    %c0_118 = arith.constant 0 : index
    %c0_119 = arith.constant 0 : index
    %96 = vector.load %arg4[%c0_117, %c0_118, %c0_119] : memref<9x128x128xbf16, #tpu.memory_space<vmem>>, vector<1x128x128xbf16>
    %97 = vector.shape_cast %96 : vector<1x128x128xbf16> to vector<128x128xbf16>
    %cst_120 = arith.constant dense<0.000000e+00> : vector<64x128xf32>
    %98 = tpu.matmul %95, %97, %cst_120 {dimension_numbers = #tpu.dot_dimension_numbers<[1], [0], [0], [1], [0, 0, 1, 1], [], []>} : vector<64x128xbf16>, vector<128x128xbf16>, vector<64x128xf32> -> vector<64x128xf32>
    %c0_121 = arith.constant 0 : index
    %c0_122 = arith.constant 0 : index
    %99 = vector.load %arg7[%c0_121, %c0_122] : memref<64x128xf32, #tpu.memory_space<vmem>>, vector<64x128xf32>
    tpu.vector_store %arg7[%c0_121, %c0_122], %98 {strides = array<i32>} : memref<64x128xf32, #tpu.memory_space<vmem>>, vector<64x128xf32>,
    %c0_123 = arith.constant 0 : index
    %c1_124 = arith.constant 1 : index
    %c0_125 = arith.constant 0 : index
    %100 = vector.load %arg8[%c0_123, %c1_124, %c0_125] : memref<10x10x128xbf16, #tpu.memory_space<vmem>>, vector<8x8x128xbf16>
    %101 = vector.shape_cast %100 : vector<8x8x128xbf16> to vector<64x128xbf16>
    %c1_126 = arith.constant 1 : index
    %c0_127 = arith.constant 0 : index
    %c0_128 = arith.constant 0 : index
    %102 = vector.load %arg4[%c1_126, %c0_127, %c0_128] : memref<9x128x128xbf16, #tpu.memory_space<vmem>>, vector<1x128x128xbf16>
    %103 = vector.shape_cast %102 : vector<1x128x128xbf16> to vector<128x128xbf16>
    %cst_129 = arith.constant dense<0.000000e+00> : vector<64x128xf32>
    %104 = tpu.matmul %101, %103, %cst_129 {dimension_numbers = #tpu.dot_dimension_numbers<[1], [0], [0], [1], [0, 0, 1, 1], [], []>} : vector<64x128xbf16>, vector<128x128xbf16>, vector<64x128xf32> -> vector<64x128xf32>
    %c0_130 = arith.constant 0 : index
    %c0_131 = arith.constant 0 : index
    %105 = vector.load %arg7[%c0_130, %c0_131] : memref<64x128xf32, #tpu.memory_space<vmem>>, vector<64x128xf32>
    %106 = arith.addf %105, %104 : vector<64x128xf32>
    %c0_132 = arith.constant 0 : index
    %c0_133 = arith.constant 0 : index
    %107 = vector.load %arg7[%c0_132, %c0_133] : memref<64x128xf32, #tpu.memory_space<vmem>>, vector<64x128xf32>
    tpu.vector_store %arg7[%c0_132, %c0_133], %106 {strides = array<i32>} : memref<64x128xf32, #tpu.memory_space<vmem>>, vector<64x128xf32>,
    %c0_134 = arith.constant 0 : index
    %c2_135 = arith.constant 2 : index
    %c0_136 = arith.constant 0 : index
    %108 = vector.load %arg8[%c0_134, %c2_135, %c0_136] : memref<10x10x128xbf16, #tpu.memory_space<vmem>>, vector<8x8x128xbf16>
    %109 = vector.shape_cast %108 : vector<8x8x128xbf16> to vector<64x128xbf16>
    %c2_137 = arith.constant 2 : index
    %c0_138 = arith.constant 0 : index
    %c0_139 = arith.constant 0 : index
    %110 = vector.load %arg4[%c2_137, %c0_138, %c0_139] : memref<9x128x128xbf16, #tpu.memory_space<vmem>>, vector<1x128x128xbf16>
    %111 = vector.shape_cast %110 : vector<1x128x128xbf16> to vector<128x128xbf16>
    %cst_140 = arith.constant dense<0.000000e+00> : vector<64x128xf32>
    %112 = tpu.matmul %109, %111, %cst_140 {dimension_numbers = #tpu.dot_dimension_numbers<[1], [0], [0], [1], [0, 0, 1, 1], [], []>} : vector<64x128xbf16>, vector<128x128xbf16>, vector<64x128xf32> -> vector<64x128xf32>
    %c0_141 = arith.constant 0 : index
    %c0_142 = arith.constant 0 : index
    %113 = vector.load %arg7[%c0_141, %c0_142] : memref<64x128xf32, #tpu.memory_space<vmem>>, vector<64x128xf32>
    %114 = arith.addf %113, %112 : vector<64x128xf32>
    %c0_143 = arith.constant 0 : index
    %c0_144 = arith.constant 0 : index
    %115 = vector.load %arg7[%c0_143, %c0_144] : memref<64x128xf32, #tpu.memory_space<vmem>>, vector<64x128xf32>
    tpu.vector_store %arg7[%c0_143, %c0_144], %114 {strides = array<i32>} : memref<64x128xf32, #tpu.memory_space<vmem>>, vector<64x128xf32>,
    %c1_145 = arith.constant 1 : index
    %c0_146 = arith.constant 0 : index
    %c0_147 = arith.constant 0 : index
    %116 = vector.load %arg8[%c1_145, %c0_146, %c0_147] : memref<10x10x128xbf16, #tpu.memory_space<vmem>>, vector<8x8x128xbf16>
    %117 = vector.shape_cast %116 : vector<8x8x128xbf16> to vector<64x128xbf16>
    %c3_148 = arith.constant 3 : index
    %c0_149 = arith.constant 0 : index
    %c0_150 = arith.constant 0 : index
    %118 = vector.load %arg4[%c3_148, %c0_149, %c0_150] : memref<9x128x128xbf16, #tpu.memory_space<vmem>>, vector<1x128x128xbf16>
    %119 = vector.shape_cast %118 : vector<1x128x128xbf16> to vector<128x128xbf16>
    %cst_151 = arith.constant dense<0.000000e+00> : vector<64x128xf32>
    %120 = tpu.matmul %117, %119, %cst_151 {dimension_numbers = #tpu.dot_dimension_numbers<[1], [0], [0], [1], [0, 0, 1, 1], [], []>} : vector<64x128xbf16>, vector<128x128xbf16>, vector<64x128xf32> -> vector<64x128xf32>
    %c0_152 = arith.constant 0 : index
    %c0_153 = arith.constant 0 : index
    %121 = vector.load %arg7[%c0_152, %c0_153] : memref<64x128xf32, #tpu.memory_space<vmem>>, vector<64x128xf32>
    %122 = arith.addf %121, %120 : vector<64x128xf32>
    %c0_154 = arith.constant 0 : index
    %c0_155 = arith.constant 0 : index
    %123 = vector.load %arg7[%c0_154, %c0_155] : memref<64x128xf32, #tpu.memory_space<vmem>>, vector<64x128xf32>
    tpu.vector_store %arg7[%c0_154, %c0_155], %122 {strides = array<i32>} : memref<64x128xf32, #tpu.memory_space<vmem>>, vector<64x128xf32>,
    %c1_156 = arith.constant 1 : index
    %c1_157 = arith.constant 1 : index
    %c0_158 = arith.constant 0 : index
    %124 = vector.load %arg8[%c1_156, %c1_157, %c0_158] : memref<10x10x128xbf16, #tpu.memory_space<vmem>>, vector<8x8x128xbf16>
    %125 = vector.shape_cast %124 : vector<8x8x128xbf16> to vector<64x128xbf16>
    %c4_159 = arith.constant 4 : index
    %c0_160 = arith.constant 0 : index
    %c0_161 = arith.constant 0 : index
    %126 = vector.load %arg4[%c4_159, %c0_160, %c0_161] : memref<9x128x128xbf16, #tpu.memory_space<vmem>>, vector<1x128x128xbf16>
    %127 = vector.shape_cast %126 : vector<1x128x128xbf16> to vector<128x128xbf16>
    %cst_162 = arith.constant dense<0.000000e+00> : vector<64x128xf32>
    %128 = tpu.matmul %125, %127, %cst_162 {dimension_numbers = #tpu.dot_dimension_numbers<[1], [0], [0], [1], [0, 0, 1, 1], [], []>} : vector<64x128xbf16>, vector<128x128xbf16>, vector<64x128xf32> -> vector<64x128xf32>
    %c0_163 = arith.constant 0 : index
    %c0_164 = arith.constant 0 : index
    %129 = vector.load %arg7[%c0_163, %c0_164] : memref<64x128xf32, #tpu.memory_space<vmem>>, vector<64x128xf32>
    %130 = arith.addf %129, %128 : vector<64x128xf32>
    %c0_165 = arith.constant 0 : index
    %c0_166 = arith.constant 0 : index
    %131 = vector.load %arg7[%c0_165, %c0_166] : memref<64x128xf32, #tpu.memory_space<vmem>>, vector<64x128xf32>
    tpu.vector_store %arg7[%c0_165, %c0_166], %130 {strides = array<i32>} : memref<64x128xf32, #tpu.memory_space<vmem>>, vector<64x128xf32>,
    %c1_167 = arith.constant 1 : index
    %c2_168 = arith.constant 2 : index
    %c0_169 = arith.constant 0 : index
    %132 = vector.load %arg8[%c1_167, %c2_168, %c0_169] : memref<10x10x128xbf16, #tpu.memory_space<vmem>>, vector<8x8x128xbf16>
    %133 = vector.shape_cast %132 : vector<8x8x128xbf16> to vector<64x128xbf16>
    %c5_170 = arith.constant 5 : index
    %c0_171 = arith.constant 0 : index
    %c0_172 = arith.constant 0 : index
    %134 = vector.load %arg4[%c5_170, %c0_171, %c0_172] : memref<9x128x128xbf16, #tpu.memory_space<vmem>>, vector<1x128x128xbf16>
    %135 = vector.shape_cast %134 : vector<1x128x128xbf16> to vector<128x128xbf16>
    %cst_173 = arith.constant dense<0.000000e+00> : vector<64x128xf32>
    %136 = tpu.matmul %133, %135, %cst_173 {dimension_numbers = #tpu.dot_dimension_numbers<[1], [0], [0], [1], [0, 0, 1, 1], [], []>} : vector<64x128xbf16>, vector<128x128xbf16>, vector<64x128xf32> -> vector<64x128xf32>
    %c0_174 = arith.constant 0 : index
    %c0_175 = arith.constant 0 : index
    %137 = vector.load %arg7[%c0_174, %c0_175] : memref<64x128xf32, #tpu.memory_space<vmem>>, vector<64x128xf32>
    %138 = arith.addf %137, %136 : vector<64x128xf32>
    %c0_176 = arith.constant 0 : index
    %c0_177 = arith.constant 0 : index
    %139 = vector.load %arg7[%c0_176, %c0_177] : memref<64x128xf32, #tpu.memory_space<vmem>>, vector<64x128xf32>
    tpu.vector_store %arg7[%c0_176, %c0_177], %138 {strides = array<i32>} : memref<64x128xf32, #tpu.memory_space<vmem>>, vector<64x128xf32>,
    %c2_178 = arith.constant 2 : index
    %c0_179 = arith.constant 0 : index
    %c0_180 = arith.constant 0 : index
    %140 = vector.load %arg8[%c2_178, %c0_179, %c0_180] : memref<10x10x128xbf16, #tpu.memory_space<vmem>>, vector<8x8x128xbf16>
    %141 = vector.shape_cast %140 : vector<8x8x128xbf16> to vector<64x128xbf16>
    %c6_181 = arith.constant 6 : index
    %c0_182 = arith.constant 0 : index
    %c0_183 = arith.constant 0 : index
    %142 = vector.load %arg4[%c6_181, %c0_182, %c0_183] : memref<9x128x128xbf16, #tpu.memory_space<vmem>>, vector<1x128x128xbf16>
    %143 = vector.shape_cast %142 : vector<1x128x128xbf16> to vector<128x128xbf16>
    %cst_184 = arith.constant dense<0.000000e+00> : vector<64x128xf32>
    %144 = tpu.matmul %141, %143, %cst_184 {dimension_numbers = #tpu.dot_dimension_numbers<[1], [0], [0], [1], [0, 0, 1, 1], [], []>} : vector<64x128xbf16>, vector<128x128xbf16>, vector<64x128xf32> -> vector<64x128xf32>
    %c0_185 = arith.constant 0 : index
    %c0_186 = arith.constant 0 : index
    %145 = vector.load %arg7[%c0_185, %c0_186] : memref<64x128xf32, #tpu.memory_space<vmem>>, vector<64x128xf32>
    %146 = arith.addf %145, %144 : vector<64x128xf32>
    %c0_187 = arith.constant 0 : index
    %c0_188 = arith.constant 0 : index
    %147 = vector.load %arg7[%c0_187, %c0_188] : memref<64x128xf32, #tpu.memory_space<vmem>>, vector<64x128xf32>
    tpu.vector_store %arg7[%c0_187, %c0_188], %146 {strides = array<i32>} : memref<64x128xf32, #tpu.memory_space<vmem>>, vector<64x128xf32>,
    %c2_189 = arith.constant 2 : index
    %c1_190 = arith.constant 1 : index
    %c0_191 = arith.constant 0 : index
    %148 = vector.load %arg8[%c2_189, %c1_190, %c0_191] : memref<10x10x128xbf16, #tpu.memory_space<vmem>>, vector<8x8x128xbf16>
    %149 = vector.shape_cast %148 : vector<8x8x128xbf16> to vector<64x128xbf16>
    %c7_192 = arith.constant 7 : index
    %c0_193 = arith.constant 0 : index
    %c0_194 = arith.constant 0 : index
    %150 = vector.load %arg4[%c7_192, %c0_193, %c0_194] : memref<9x128x128xbf16, #tpu.memory_space<vmem>>, vector<1x128x128xbf16>
    %151 = vector.shape_cast %150 : vector<1x128x128xbf16> to vector<128x128xbf16>
    %cst_195 = arith.constant dense<0.000000e+00> : vector<64x128xf32>
    %152 = tpu.matmul %149, %151, %cst_195 {dimension_numbers = #tpu.dot_dimension_numbers<[1], [0], [0], [1], [0, 0, 1, 1], [], []>} : vector<64x128xbf16>, vector<128x128xbf16>, vector<64x128xf32> -> vector<64x128xf32>
    %c0_196 = arith.constant 0 : index
    %c0_197 = arith.constant 0 : index
    %153 = vector.load %arg7[%c0_196, %c0_197] : memref<64x128xf32, #tpu.memory_space<vmem>>, vector<64x128xf32>
    %154 = arith.addf %153, %152 : vector<64x128xf32>
    %c0_198 = arith.constant 0 : index
    %c0_199 = arith.constant 0 : index
    %155 = vector.load %arg7[%c0_198, %c0_199] : memref<64x128xf32, #tpu.memory_space<vmem>>, vector<64x128xf32>
    tpu.vector_store %arg7[%c0_198, %c0_199], %154 {strides = array<i32>} : memref<64x128xf32, #tpu.memory_space<vmem>>, vector<64x128xf32>,
    %c2_200 = arith.constant 2 : index
    %c2_201 = arith.constant 2 : index
    %c0_202 = arith.constant 0 : index
    %156 = vector.load %arg8[%c2_200, %c2_201, %c0_202] : memref<10x10x128xbf16, #tpu.memory_space<vmem>>, vector<8x8x128xbf16>
    %157 = vector.shape_cast %156 : vector<8x8x128xbf16> to vector<64x128xbf16>
    %c8_203 = arith.constant 8 : index
    %c0_204 = arith.constant 0 : index
    %c0_205 = arith.constant 0 : index
    %158 = vector.load %arg4[%c8_203, %c0_204, %c0_205] : memref<9x128x128xbf16, #tpu.memory_space<vmem>>, vector<1x128x128xbf16>
    %159 = vector.shape_cast %158 : vector<1x128x128xbf16> to vector<128x128xbf16>
    %cst_206 = arith.constant dense<0.000000e+00> : vector<64x128xf32>
    %160 = tpu.matmul %157, %159, %cst_206 {dimension_numbers = #tpu.dot_dimension_numbers<[1], [0], [0], [1], [0, 0, 1, 1], [], []>} : vector<64x128xbf16>, vector<128x128xbf16>, vector<64x128xf32> -> vector<64x128xf32>
    %c0_207 = arith.constant 0 : index
    %c0_208 = arith.constant 0 : index
    %161 = vector.load %arg7[%c0_207, %c0_208] : memref<64x128xf32, #tpu.memory_space<vmem>>, vector<64x128xf32>
    %162 = arith.addf %161, %160 : vector<64x128xf32>
    %c0_209 = arith.constant 0 : index
    %c0_210 = arith.constant 0 : index
    %163 = vector.load %arg7[%c0_209, %c0_210] : memref<64x128xf32, #tpu.memory_space<vmem>>, vector<64x128xf32>
    tpu.vector_store %arg7[%c0_209, %c0_210], %162 {strides = array<i32>} : memref<64x128xf32, #tpu.memory_space<vmem>>, vector<64x128xf32>,
    %c0_211 = arith.constant 0 : index
    %c0_212 = arith.constant 0 : index
    %164 = vector.load %arg7[%c0_211, %c0_212] : memref<64x128xf32, #tpu.memory_space<vmem>>, vector<64x128xf32>
    %c0_213 = arith.constant 0 : index
    %c0_214 = arith.constant 0 : index
    %165 = vector.load %arg5[%c0_213, %c0_214] : memref<1x128xf32, #tpu.memory_space<vmem>>, vector<1x128xf32>
    %166 = vector.broadcast %165 : vector<1x128xf32> to vector<64x128xf32>
    %167 = arith.addf %164, %166 : vector<64x128xf32>
    %cst_215 = arith.constant 0.000000e+00 : f32
    %168 = vector.broadcast %cst_215 : f32 to vector<64x128xf32>
    %169 = arith.maximumf %167, %168 : vector<64x128xf32>
    %c0_216 = arith.constant 0 : index
    %c0_217 = arith.constant 0 : index
    %c0_218 = arith.constant 0 : index
    %170 = vector.load %arg6[%c0_216, %c0_217, %c0_218] : memref<1x64x128xf32, #tpu.memory_space<vmem>>, vector<1x64x128xf32>
    %171 = vector.shape_cast %170 : vector<1x64x128xf32> to vector<64x128xf32>
    %172 = vector.shape_cast %169 : vector<64x128xf32> to vector<1x64x128xf32>
    tpu.vector_store %arg6[%c0_216, %c0_217, %c0_218], %172 {strides = array<i32>} : memref<1x64x128xf32, #tpu.memory_space<vmem>>, vector<1x64x128xf32>,
    return
  }
  func.func @transform_0(%arg0: i32) -> (i32, i32, i32, i32) {
    %c0_i32 = arith.constant 0 : i32
    %c0_i32_0 = arith.constant 0 : i32
    %c0_i32_1 = arith.constant 0 : i32
    %c0_i32_2 = arith.constant 0 : i32
    return %arg0, %c0_i32, %c0_i32_0, %c0_i32_1 : i32, i32, i32, i32
  }
  func.func @transform_1(%arg0: i32) -> (i32, i32, i32) {
    %c0_i32 = arith.constant 0 : i32
    %c0_i32_0 = arith.constant 0 : i32
    %c0_i32_1 = arith.constant 0 : i32
    %c0_i32_2 = arith.constant 0 : i32
    return %c0_i32, %c0_i32_0, %c0_i32_1 : i32, i32, i32
  }
  func.func @transform_2(%arg0: i32) -> (i32, i32) {
    %c0_i32 = arith.constant 0 : i32
    %c0_i32_0 = arith.constant 0 : i32
    %c0_i32_1 = arith.constant 0 : i32
    return %c0_i32, %c0_i32_0 : i32, i32
  }
  func.func @transform_3(%arg0: i32) -> (i32, i32, i32) {
    %c0_i32 = arith.constant 0 : i32
    %c0_i32_0 = arith.constant 0 : i32
    %c0_i32_1 = arith.constant 0 : i32
    %c0_i32_2 = arith.constant 0 : i32
    return %c0_i32, %c0_i32_0, %c0_i32_1 : i32, i32, i32
  }
  func.func @transform_4(%arg0: i32) -> (i32, i32) {
    %c0_i32 = arith.constant 0 : i32
    %c0_i32_0 = arith.constant 0 : i32
    %c0_i32_1 = arith.constant 0 : i32
    return %c0_i32, %c0_i32_0 : i32, i32
  }
  func.func @transform_5(%arg0: i32) -> (i32, i32, i32) {
    %c0_i32 = arith.constant 0 : i32
    %c0_i32_0 = arith.constant 0 : i32
    %c0_i32_1 = arith.constant 0 : i32
    return %arg0, %c0_i32, %c0_i32_0 : i32, i32, i32
  }
}

</mosaic_0001>

<bundles_post_ra>
// kernel: sepconv_forward.1
= control target key start
LH: loop header
LB: loop body
LE: loop exit
PB: predicated region body
PF: predicated region fallthrough
CT: control target
= control target key end

     0   :  { %s5470_s18 = smov 0   ;;  %s6319_s0 = inlined_call_operand.vmem [shape: bf16[2,36,9,4], index: 0, kind: input, shape index: {}]   ;;  %s6320_s1 = inlined_call_operand.vmem [shape: bf16[9,4,128], index: 1, kind: input, shape index: {}]   ;;  %s6321_s2 = inlined_call_operand.vmem [shape: f32[1,128], index: 2, kind: input, shape index: {}]   ;;  %s6322_s3 = inlined_call_operand.vmem [shape: bf16[9,128,128], index: 3, kind: input, shape index: {}]   ;;  %s6323_s4 = inlined_call_operand.vmem [shape: f32[1,128], index: 4, kind: input, shape index: {}]   ;;  %s6324_s5 = inlined_call_operand.vmem [shape: f32[2,64,128], index: 5, kind: output, shape index: {}]  }
   0x1 LB: > { %s4260_s19 = sadd.s32 4294967295, %s5437_s18   ;;  %p4264_p0 = scmp.ge.s32.totalorder %s5437_s18, 1  ;;  %s5437_s18 = sphi %s5470_s18, %s15_s18  }
   0x2   : > { %p187_p1 = scmp.lt.s32.totalorder %s5437_s18, 3 }
   0x4   : > { %p188_p2 = pnand %p4264_p0, %p187_p1 }
   0x5   : > { %v234_v0 = vld [vmem:[%s6320_s1] sm:$0x3] (!%p188_p2)  ;;  %vm268_vm0 = vcmask (!%p188_p2), 1041408   ;;  %p215_p3 = scmp.lt.s32.totalorder (!%p188_p2), %s4260_s19, 1  ;;  %v4284_v2 = vld [vmem:[%s6320_s1 + $0x2] sm:$0x3] (!%p188_p2) }
   0x6   : > { %191 = sbr.rel (%p188_p2) target bundleno = 807 (0x327), region = 40  ;;  %5304 = vmatprep.subr.msk.bf16.mxu0 (!%p188_p2), %vm268_vm0, %v234_v0  ;;  %v270_v1 = vsel (!%p188_p2), %vm268_vm0, %v234_v0, 0  ;;  %vm255_vm1 = vcmask (!%p188_p2), 31744   ;;  %v389_v3 = vsel (!%p188_p2), %vm268_vm0, %v4284_v2, 0  ;;  %v4293_v5 = vld [vmem:[%s6320_s1 + $0x4] sm:$0x3] (!%p188_p2) }
   0x7   : > { %4855 = vmatpush3.bf16.msra.mxu0 (!%p188_p2), %v270_v1  ;;  %vm496_vm2 = vsmask.f32 (!%p188_p2), 3328  ;;  %vm497_vm3 = vsmask.f32 (!%p188_p2), 7440  ;;  %v5348_v40 = vld [vmem:[%s6322_s3 + $0x80] sm:$0xff] (!%p188_p2)   ;;  %v638_v51 = vsel (!%p188_p2), %vm268_vm0, %v4293_v5, 0 }
   0x8   : > { %5305 = vmatprep.subr.msk.bf16.mxu0 (!%p188_p2), %vm268_vm0, %v4284_v2  ;;  %vm5526_vm4 = vmor (!%p188_p2), %vm496_vm2, %vm497_vm3  ;;  %4992 = vmatprep.subr.bf16.mxu1 (!%p188_p2), %v5348_v40  ;;  %v4310_v56 = vld [vmem:[%s6320_s1 + $0x6] sm:$0x3] (!%p188_p2)  ;;  %vm1797_vm5 = vcmask (!%p188_p2), 1040384   ;;  %vm1798_vm6 = vsmask.f32 (!%p188_p2), 256  ;;  %vm1975_vm10 = vcmask (!%p188_p2), 1043456  }
   0x9   : > { %4993 = vmatpush3.bf16.msra.mxu1 (!%p188_p2), %v5348_v40  ;;  %vm1830_vm7 = vsmask.f32 (!%p188_p2), 7938  ;;  %vm5808_vm8 = vmand (!%p188_p2), %vm1797_vm5, %vm1798_vm6  ;;  %vm2524_vm12 = vcmask (!%p188_p2), 1042432   ;;  %vm2525_vm13 = vcmask (!%p188_p2), 1046532  }
   0xa   : > { %vm5815_vm9 = vmand (!%p188_p2), %vm1797_vm5, %vm1830_vm7 }
   0xb   : > { %vm5921_vm11 = vmand (!%p188_p2), %vm1975_vm10, %vm1830_vm7 }
   0xc   : > { %vm5961_vm14 = vmor (!%p188_p2), %vm2524_vm12, %vm2525_vm13 }
   0xd   : > { %s6336_s19 = smov (!%p215_p3, %s4260_s19), 1 }
   0xe   : > { %s5313_s24 = smul.u32 288, %s6336_s19  ;;  %s4692_s29 = sshll.u32 %s6336_s19, 6 }
   0xf   : > { %s6306_s7 = scalar_lea.vmem %s6324_s5, %s4692_s29 }
  0x10   : > { %s5493_s27 = scalar_lea.vmem %s6319_s0, %s5313_s24 }
  0x11   : > { %v5323_v4 = vld [vmem:[%s5493_s27] ss:$8 sps:$4 sm:$0xff]   ;;  %v5324_v6 = vld [vmem:[%s5493_s27 + $0x10] ss:$8 sps:$4 sm:$0xff]   ;;  %v481_v11 = vld [vmem:[%s5493_s27 + $0x4] sm:$0x1] }
  0x12   : > { %4856 = vmatprep.mubr.msk.bf16.mxu0 %vm255_vm1, %v5323_v4  ;;  %v5325_v7 = vld [vmem:[%s5493_s27 + $0x20] ss:$8 sps:$4 sm:$0xff]   ;;  %v5326_v8 = vld [vmem:[%s5493_s27 + $0x30] ss:$8 sps:$4 sm:$0xff]   ;;  %v483_v13 = vld [vmem:[%s5493_s27 + $0xc] sm:$0x1] }
  0x13   : > { %4857 = vmatmul.mubr.msk.bf16.vlgmr.msra.gmra.mrb[0].mxu0 %vm255_vm1, %v5324_v6  ;;  %v5327_v9 = vld [vmem:[%s5493_s27 + $0x48] ss:$8 sps:$4 sm:$0xff]   ;;  %v480_v10 = vld [vmem:[%s5493_s27] sm:$0xf]  ;;  %v509_v17 = vshll.u32 %v481_v11, 16  ;;  %v523_v23 = vshll.u32 %v483_v13, 16 }
  0x14   : > { %4865 = vmatpush3.bf16.msra.mxu0 %v389_v3  ;;  %4860 = vmatprep.mubr.msk.bf16.mxu0 %vm255_vm1, %v5325_v7  ;;  %v482_v12 = vld [vmem:[%s5493_s27 + $0x8] sm:$0xf]  ;;  %v500_v14 = vshrl.u32 %v480_v10, 16  ;;  %v503_v15 = vshll.u32 %v480_v10, 16  ;;  %v484_v19 = vld [vmem:[%s5493_s27 + $0x10] sm:$0xf] }
  0x15   : > { %5306 = vmatprep.subr.msk.bf16.mxu0 %vm268_vm0, %v4293_v5  ;;  %v514_v16 = vshrl.u32 %v482_v12, 16  ;;  %v517_v18 = vshll.u32 %v482_v12, 16  ;;  %v486_v24 = vld [vmem:[%s5493_s27 + $0x18] sm:$0xf]  ;;  %v528_v26 = vshrl.u32 %v484_v19, 16  ;;  %v531_v27 = vshll.u32 %v484_v19, 16 }
  0x16   : > { %v502_v20 = vrot.slane %v500_v14, 4  ;;  %v505_v21 = vrot.slane %v503_v15, 5  ;;  %v5328_v28 = vld [vmem:[%s5493_s27 + $0x58] ss:$8 sps:$4 sm:$0xff]   ;;  %v485_v30 = vld [vmem:[%s5493_s27 + $0x14] sm:$0x1] }
  0x17   : > { %v516_v22 = vrot.slane %v514_v16, 4  ;;  %v519_v25 = vrot.slane %v517_v18, 5  ;;  %v542_v31 = vshrl.u32 %v486_v24, 16  ;;  %v545_v32 = vshll.u32 %v486_v24, 16  ;;  %v488_v33 = vld [vmem:[%s5493_s27 + $0x20] sm:$0xf] }
  0x18   : > { %v506_v29 = vor.u32 %v505_v21, %v502_v20  ;;  %v5329_v34 = vld [vmem:[%s5493_s27 + $0x68] ss:$8 sps:$4 sm:$0xff]   ;;  %v511_v35 = vrot.slane %v509_v17, 5  ;;  %v487_v37 = vld [vmem:[%s5493_s27 + $0x1c] sm:$0x1]  ;;  %v530_v38 = vrot.slane %v528_v26, 4 }
  0x19   : > { %v520_v36 = vor.u32 %v519_v25, %v516_v22  ;;  %v533_v39 = vrot.slane %v531_v27, 5  ;;  %v525_v43 = vrot.slane %v523_v23, 5  ;;  %v544_v44 = vrot.slane %v542_v31, 4  ;;  %v490_v46 = vld [vmem:[%s5493_s27 + $0x28] sm:$0xf] }
  0x1a   : > { %v507_v42 = vrot.slane %v506_v29, 4  ;;  %v547_v45 = vrot.slane %v545_v32, 5  ;;  %v537_v48 = vshll.u32 %v485_v30, 16  ;;  %v489_v49 = vld [vmem:[%s5493_s27 + $0x24] sm:$0x1]  ;;  %v556_v50 = vshrl.u32 %v488_v33, 16 }
  0x1b   : > { %4861 = vmatmul.mubr.msk.bf16.gmra.mrb[4].mxu0 %vm255_vm1, %v5326_v8  ;;  %v521_v47 = vrot.slane %v520_v36, 4  ;;  %v551_v52 = vshll.u32 %v487_v37, 16  ;;  %v491_v53 = vld [vmem:[%s5493_s27 + $0x2c] sm:$0x1]  ;;  %v559_v54 = vshll.u32 %v488_v33, 16  ;;  %v534_v57 = vor.u32 %v533_v39, %v530_v38 }
  0x1c   : > { %4866 = vmatprep.mubr.msk.bf16.mxu0 %vm255_vm1, %v5327_v9  ;;  %v512_v55 = vsel %vm5526_vm4, %v507_v42, %v511_v35  ;;  %v558_v58 = vrot.slane %v556_v50, 4  ;;  %v570_v59 = vshrl.u32 %v490_v46, 16  ;;  %v492_v60 = vld [vmem:[%s5493_s27 + $0x30] sm:$0xf]  ;;  %v548_v62 = vor.u32 %v547_v45, %v544_v44  ;;  %v494_v1 = vld [vmem:[%s5493_s27 + $0x38] sm:$0xf] }
  0x1d   : > { %v526_v61 = vsel %vm5526_vm4, %v521_v47, %v525_v43  ;;  %v561_v63 = vrot.slane %v559_v54, 5  ;;  %v565_v0 = vshll.u32 %v489_v49, 16  ;;  %v539_v2 = vrot.slane %v537_v48, 5  ;;  %v5330_v6 = vld [vmem:[%s5493_s27 + $0x78] ss:$8 sps:$4 sm:$0xff]  }
  0x1e   : > { %v572_v3 = vrot.slane %v570_v59, 4  ;;  %v573_v4 = vshll.u32 %v490_v46, 16  ;;  %v579_v5 = vshll.u32 %v491_v53, 16  ;;  %v553_v7 = vrot.slane %v551_v52, 5  ;;  %v493_v14 = vld [vmem:[%s5493_s27 + $0x34] sm:$0x1] }
  0x1f   : > { %v562_v8 = vor.u32 %v561_v63, %v558_v58  ;;  %v584_v9 = vshrl.u32 %v492_v60, 16  ;;  %v587_v10 = vshll.u32 %v492_v60, 16  ;;  %v4294_v11 = vcombine.low %v512_v55, %v526_v61  ;;  %v495_v20 = vld [vmem:[%s5493_s27 + $0x3c] sm:$0x1]  ;;  %v4336_v44 = vld [vmem:[%s5493_s27 + $0x90] sm:$0xf] }
  0x20   : > { %v535_v12 = vrot.slane %v534_v57, 4  ;;  %v575_v13 = vrot.slane %v573_v4, 5  ;;  %v549_v15 = vrot.slane %v548_v62, 4  ;;  %v567_v16 = vrot.slane %v565_v0, 5  ;;  %v4327_v45 = vld [vmem:[%s6320_s1 + $0x8] sm:$0x3] }
  0x21   : > { %v581_v17 = vrot.slane %v579_v5, 5  ;;  %v598_v18 = vshrl.u32 %v494_v1, 16  ;;  %v586_v21 = vrot.slane %v584_v9, 4  ;;  %v589_v22 = vrot.slane %v587_v10, 5  ;;  %v5568_v46 = vld [vmem:[%s6320_s1 + $0xa] sm:$0x3] }
  0x22   : > { %v576_v19 = vor.u32 %v575_v13, %v572_v3  ;;  %v601_v23 = vshll.u32 %v494_v1, 16  ;;  %v563_v24 = vrot.slane %v562_v8, 4  ;;  %v593_v29 = vshll.u32 %v493_v14, 16  ;;  %v4338_v47 = vld [vmem:[%s5493_s27 + $0x98] sm:$0xf] }
  0x23   : > { %4867 = vmatmul.mubr.msk.bf16.vlgmr.msra.gmra.mrb[0].mxu0 %vm255_vm1, %v5328_v28  ;;  %v600_v25 = vrot.slane %v598_v18, 4  ;;  %v540_v28 = vsel %vm5526_vm4, %v535_v12, %v539_v2  ;;  %v554_v30 = vsel %vm5526_vm4, %v549_v15, %v553_v7  ;;  %v590_v31 = vor.u32 %v589_v22, %v586_v21  ;;  %v4340_v52 = vld [vmem:[%s5493_s27 + $0xa0] sm:$0xf]  ;;  %v5331_v58 = vld [vmem:[%s5493_s27 + $0x90] ss:$8 sps:$4 sm:$0xff]  }
  0x24   : > { %4875 = vmatpush3.bf16.msra.mxu0 %v638_v51  ;;  %4870 = vmatprep.mubr.msk.bf16.mxu0 %vm255_vm1, %v5329_v34  ;;  %v577_v26 = vrot.slane %v576_v19, 4  ;;  %v603_v27 = vrot.slane %v601_v23, 5  ;;  %v607_v33 = vshll.u32 %v495_v20, 16  ;;  %v568_v34 = vsel %vm5526_vm4, %v563_v24, %v567_v16  ;;  %v4342_v59 = vld [vmem:[%s5493_s27 + $0xa8] sm:$0xf] }
  0x25   : > { %5307 = vmatprep.subr.msk.bf16.mxu0 %vm268_vm0, %v4310_v56  ;;  %v4295_v36 = vcombine.low %v540_v28, %v554_v30  ;;  %v595_v37 = vrot.slane %v593_v29, 5  ;;  %v591_v39 = vrot.slane %v590_v31, 4  ;;  %v773_v43 = vsel %vm268_vm0, %v4310_v56, 0  ;;  %v4337_v62 = vld [vmem:[%s5493_s27 + $0x94] sm:$0x1] }
  0x26   : > { %v604_v32 = vor.u32 %v603_v27, %v600_v25  ;;  %v582_v35 = vsel %vm5526_vm4, %v577_v26, %v581_v17  ;;  %v609_v42 = vrot.slane %v607_v33, 5  ;;  %v1016_v50 = vshrl.u32 %v4336_v44, 16  ;;  %v4339_v63 = vld [vmem:[%s5493_s27 + $0x9c] sm:$0x1]  ;;  %v5590_v2 = vld [vmem:[%s6320_s1 + $0xc] sm:$0x3] }
  0x27   : > { %v4296_v38 = vcombine.low %v568_v34, %v582_v35  ;;  %v596_v48 = vsel %vm5526_vm4, %v591_v39, %v595_v37  ;;  %v1019_v51 = vshll.u32 %v4336_v44, 16  ;;  %v908_v53 = vsel %vm268_vm0, %v4327_v45, 0  ;;  %v4341_v3 = vld [vmem:[%s5493_s27 + $0xa4] sm:$0x1]  ;;  %v5596_v4 = vld [vmem:[%s6320_s1 + $0xe] sm:$0x3] }
  0x28   : > { %v605_v40 = vrot.slane %v604_v32, 4  ;;  %v5581_v54 = vsel %vm268_vm0, %v5568_v46, 0  ;;  %v1030_v55 = vshrl.u32 %v4338_v47, 16  ;;  %v1033_v56 = vshll.u32 %v4338_v47, 16  ;;  %v5601_v9 = vld [vmem:[%s6320_s1 + $0x10] sm:$0x3] }
  0x29   : > { %v1044_v60 = vshrl.u32 %v4340_v52, 16  ;;  %v1047_v61 = vshll.u32 %v4340_v52, 16  ;;  %v1018_v0 = vrot.slane %v1016_v50, 4  ;;  %v1021_v1 = vrot.slane %v1019_v51, 5  ;;  %v4343_v12 = vld [vmem:[%s5493_s27 + $0xac] sm:$0x1] }
  0x2a   : > { %v610_v49 = vsel %vm5526_vm4, %v605_v40, %v609_v42  ;;  %v1032_v5 = vrot.slane %v1030_v55, 4  ;;  %v1058_v7 = vshrl.u32 %v4342_v59, 16  ;;  %v1061_v8 = vshll.u32 %v4342_v59, 16  ;;  %v4344_v18 = vld [vmem:[%s5493_s27 + $0xb0] sm:$0xf] }
  0x2b   : > { %4871 = vmatmul.mubr.msk.bf16.gmra.mrb[4].mxu0 %vm255_vm1, %v5330_v6  ;;  %v4297_v57 = vcombine.low %v596_v48, %v610_v49  ;;  %v1035_v6 = vrot.slane %v1033_v56, 5  ;;  %v1025_v10 = vshll.u32 %v4337_v62, 16  ;;  %v1046_v13 = vrot.slane %v1044_v60, 4  ;;  %v5332_v19 = vld [vmem:[%s5493_s27 + $0xa0] ss:$8 sps:$4 sm:$0xff]  }
  0x2c   : > { %4876 = vmatprep.mubr.msk.bf16.mxu0 %vm255_vm1, %v4294_v11  ;;  %v1039_v11 = vshll.u32 %v4339_v63, 16  ;;  %v1049_v14 = vrot.slane %v1047_v61, 5  ;;  %v1022_v15 = vor.u32 %v1021_v1, %v1018_v0  ;;  %v1053_v16 = vshll.u32 %v4341_v3, 16  ;;  %v5333_v22 = vld [vmem:[%s5493_s27 + $0xb0] ss:$8 sps:$4 sm:$0xff]  }
  0x2d   : > { %v5608_v17 = vsel %vm268_vm0, %v5590_v2, 0  ;;  %v5614_v20 = vsel %vm268_vm0, %v5596_v4, 0  ;;  %v5618_v21 = vsel %vm268_vm0, %v5601_v9, 0  ;;  %v1036_v23 = vor.u32 %v1035_v6, %v1032_v5  ;;  %v4345_v33 = vld [vmem:[%s5493_s27 + $0xb4] sm:$0x1] }
  0x2e   : > { %v1060_v24 = vrot.slane %v1058_v7, 4  ;;  %v1063_v25 = vrot.slane %v1061_v8, 5  ;;  %v1067_v26 = vshll.u32 %v4343_v12, 16  ;;  %v5621_v27 = vrot.slane %v1025_v10, 5  ;;  %v4346_v34 = vld [vmem:[%s5493_s27 + $0xb8] sm:$0xf] }
  0x2f   : > { %v5623_v28 = vrot.slane %v1039_v11, 5  ;;  %v1050_v29 = vor.u32 %v1049_v14, %v1046_v13  ;;  %v1072_v30 = vshrl.u32 %v4344_v18, 16  ;;  %v5625_v31 = vrot.slane %v1022_v15, 4  ;;  %v4347_v35 = vld [vmem:[%s5493_s27 + $0xbc] sm:$0x1] }
  0x30   : > { %v5627_v32 = vrot.slane %v1053_v16, 5  ;;  %v5633_v37 = vrot.slane %v1036_v23, 4  ;;  %v5635_v39 = vrot.slane %v1067_v26, 5  ;;  %v4350_v40 = vld [vmem:[%s5493_s27 + $0xc8] sm:$0xf]  ;;  %v1075_v44 = vshll.u32 %v4344_v18, 16 }
  0x31   : > { %v5639_v42 = vrot.slane %v1050_v29, 4  ;;  %v1086_v47 = vshrl.u32 %v4346_v34, 16  ;;  %v1089_v48 = vshll.u32 %v4346_v34, 16  ;;  %v5334_v51 = vld [vmem:[%s5493_s27 + $0xc0] ss:$8 sps:$4 sm:$0xff]   ;;  %v1114_v55 = vshrl.u32 %v4350_v40, 16 }
  0x32   : > { %v4349_v52 = vld [vmem:[%s5493_s27 + $0xc4] sm:$0x1]  ;;  %v1117_v56 = vshll.u32 %v4350_v40, 16  ;;  %v1077_v59 = vrot.slane %v1075_v44, 5  ;;  %v4351_v63 = vld [vmem:[%s5493_s27 + $0xcc] sm:$0x1] }
  0x33   : > { %4877 = vmatmul.mubr.msk.bf16.vlgmr.msra.gmra.mrb[0].mxu0 %vm255_vm1, %v4295_v36  ;;  %v4348_v36 = vld [vmem:[%s5493_s27 + $0xc0] sm:$0xf]  ;;  %v1088_v61 = vrot.slane %v1086_v47, 4  ;;  %v1091_v62 = vrot.slane %v1089_v48, 5  ;;  %v4395_v5 = vld [vmem:[%s5493_s27 + $0x8] sm:$0xf] }
  0x34   : > { %4885 = vmatpush3.bf16.msra.mxu0 %v773_v43  ;;  %4880 = vmatprep.mubr.msk.bf16.mxu0 %vm255_vm1, %v4296_v38  ;;  %v1064_v38 = vor.u32 %v1063_v25, %v1060_v24  ;;  %v5641_v43 = vrot.slane %v1072_v30, 4  ;;  %v1100_v49 = vshrl.u32 %v4348_v36, 16  ;;  %v1103_v50 = vshll.u32 %v4348_v36, 16  ;;  %v4397_v8 = vld [vmem:[%s5493_s27 + $0x10] sm:$0xf] }
  0x35   : > { %5308 = vmatprep.subr.msk.bf16.mxu0 %vm268_vm0, %v4327_v45  ;;  %v1081_v45 = vshll.u32 %v4345_v33, 16  ;;  %v1119_v3 = vrot.slane %v1117_v56, 5  ;;  %v1109_v7 = vshll.u32 %v4349_v52, 16  ;;  %v1532_v10 = vshrl.u32 %v4395_v5, 16  ;;  %v4396_v12 = vld [vmem:[%s5493_s27 + $0xc] sm:$0x1] }
  0x36   : > { %v1102_v0 = vrot.slane %v1100_v49, 4  ;;  %v1105_v1 = vrot.slane %v1103_v50, 5  ;;  %v1535_v11 = vshll.u32 %v4395_v5, 16  ;;  %v1546_v13 = vshrl.u32 %v4397_v8, 16  ;;  %v4399_v15 = vld [vmem:[%s5493_s27 + $0x18] sm:$0xf] }
  0x37   : > { %v5651_v60 = vrot.slane %v1081_v45, 5  ;;  %v1549_v14 = vshll.u32 %v4397_v8, 16  ;;  %v1078_v16 = vor.u32 %v1077_v59, %v5641_v43  ;;  %v4398_v18 = vld [vmem:[%s5493_s27 + $0x14] sm:$0x1]  ;;  %v4401_v23 = vld [vmem:[%s5493_s27 + $0x20] sm:$0xf]  ;;  %v1092_v24 = vor.u32 %v1091_v62, %v1088_v61 }
  0x38   : > { %v1106_v25 = vor.u32 %v1105_v1, %v1102_v0  ;;  %v1123_v29 = vshll.u32 %v4351_v63, 16  ;;  %v4400_v30 = vld [vmem:[%s5493_s27 + $0x1c] sm:$0x1]  ;;  %v5336_v33 = vld [vmem:[%s5493_s27 + $0xe8] ss:$8 sps:$4 sm:$0xff]   ;;  %v1548_v34 = vrot.slane %v1546_v13, 4 }
  0x39   : > { %v1560_v36 = vshrl.u32 %v4399_v15, 16  ;;  %v5337_v40 = vld [vmem:[%s5493_s27 + $0xf8] ss:$8 sps:$4 sm:$0xff]   ;;  %v1541_v44 = vshll.u32 %v4396_v12, 16  ;;  %v1555_v45 = vshll.u32 %v4398_v18, 16  ;;  %v1574_v43 = vshrl.u32 %v4401_v23, 16 }
  0x3a   : > { %v1577_v47 = vshll.u32 %v4401_v23, 16  ;;  %v4402_v49 = vld [vmem:[%s5493_s27 + $0x24] sm:$0x1]  ;;  %v1569_v52 = vshll.u32 %v4400_v30, 16  ;;  %v1093_v56 = vrot.slane %v1092_v24, 4  ;;  %v5673_v59 = vrot.slane %v1106_v25, 4 }
  0x3b   : > { %4881 = vmatmul.mubr.msk.bf16.gmra.mrb[4].mxu0 %vm255_vm1, %v4297_v57  ;;  %v5335_v57 = vld [vmem:[%s5493_s27 + $0xd8] ss:$8 sps:$4 sm:$0xff]   ;;  %v1562_v50 = vrot.slane %v1560_v36, 4  ;;  %v1576_v62 = vrot.slane %v1574_v43, 4  ;;  %v4403_v0 = vld [vmem:[%s5493_s27 + $0x28] sm:$0xf] }
  0x3c   : > { %4886 = vmatprep.mubr.msk.bf16.mxu0 %vm255_vm1, %v5331_v58  ;;  %v5649_v58 = vrot.slane %v1064_v38, 4  ;;  %v1563_v38 = vshll.u32 %v4399_v15, 16  ;;  %v1579_v63 = vrot.slane %v1577_v47, 5  ;;  %v1583_v5 = vshll.u32 %v4402_v49, 16  ;;  %v5689_v12 = vld [vmem:[%s5493_s27 + $0x2c] sm:$0x1] }
  0x3d   : > { %v5338_v13 = vld [vmem:[%s5493_s27 + $0x108] ss:$8 sps:$4 sm:$0xff]   ;;  %v1588_v15 = vshrl.u32 %v4403_v0, 16  ;;  %v4407_v18 = vld [vmem:[%s5493_s27 + $0x38] sm:$0xf] }
  0x3e   : > { %v5705_v24 = vrot.slane %v1583_v5, 5  ;;  %v5708_v25 = vld [vmem:[%s5493_s27 + $0x34] sm:$0x1]  ;;  %v1616_v30 = vshrl.u32 %v4407_v18, 16 }
  0x40   : > { %v1618_v49 = vrot.slane %v1616_v30, 4  ;;  %v1841_v30 = vld [vmem:[#allocation3 + $0x1c] sm:$0x1] }
  0x43   : > { %4887 = vmatmul.mubr.msk.bf16.vlgmr.msra.gmra.mrb[0].mxu0 %vm255_vm1, %v5332_v19  ;;  %v1534_v19 = vrot.slane %v1532_v10, 4 }
  0x44   : > { %4895 = vmatpush3.bf16.msra.mxu0 %v908_v53  ;;  %4890 = vmatprep.mubr.msk.bf16.mxu0 %vm255_vm1, %v5333_v22  ;;  %v1095_v53 = vshll.u32 %v4347_v35, 16  ;;  %v1537_v22 = vrot.slane %v1535_v11, 5  ;;  %v1551_v35 = vrot.slane %v1549_v14, 5  ;;  %v5686_v11 = vrot.slane %v1569_v52, 5 }
  0x45   : > { %5309 = vmatprep.subr.msk.bf16.mxu0 %vm268_vm0, %v5568_v46  ;;  %v1116_v46 = vrot.slane %v1114_v55, 4  ;;  %v1079_v55 = vrot.slane %v1078_v16, 4  ;;  %v1028_v14 = vsel %vm5526_vm4, %v5625_v31, %v5621_v27  ;;  %v1591_v16 = vshll.u32 %v4403_v0, 16  ;;  %v4408_v0 = vld [vmem:[%s5493_s27 + $0x3c] sm:$0x1] }
  0x46   : > { %v5655_v6 = vrot.slane %v1095_v53, 5  ;;  %v1538_v48 = vor.u32 %v1537_v22, %v1534_v19  ;;  %v5671_v53 = vrot.slane %v1123_v29, 5  ;;  %v1552_v61 = vor.u32 %v1551_v35, %v1548_v34 }
  0x47   : > { %v1120_v26 = vor.u32 %v1119_v3, %v1116_v46  ;;  %v5677_v46 = vrot.slane %v1541_v44, 5  ;;  %v5679_v3 = vrot.slane %v1555_v45, 5  ;;  %v1580_v22 = vor.u32 %v1579_v63, %v1576_v62 }
  0x48   : > { %v5684_v8 = vrot.slane %v1538_v48, 4  ;;  %v5703_v19 = vrot.slane %v1552_v61, 4  ;;  %v1590_v29 = vrot.slane %v1588_v15, 4  ;;  %v1070_v44 = vsel %vm5526_vm4, %v5649_v58, %v5635_v39 }
  0x49   : > { %v1121_v1 = vrot.slane %v1120_v26, 4  ;;  %v5714_v34 = vrot.slane %v1580_v22, 4  ;;  %v1084_v47 = vsel %vm5526_vm4, %v1079_v55, %v5651_v60  ;;  %v1098_v48 = vsel %vm5526_vm4, %v1093_v56, %v5655_v6  ;;  %v5339_v60 = vld [vmem:[%s5493_s27 + $0x8] ss:$8 sps:$4 sm:$0xff]   ;;  %v5342_v56 = vld [vmem:[%s5493_s27 + $0x38] ss:$8 sps:$4 sm:$0xff]  }
  0x4a   : > { %v5341_v55 = vld [vmem:[%s5493_s27 + $0x28] ss:$8 sps:$4 sm:$0xff]   ;;  %v1558_v61 = vsel %vm5526_vm4, %v5703_v19, %v5679_v3 }
  0x4b   : > { %4891 = vmatmul.mubr.msk.bf16.gmra.mrb[4].mxu0 %vm255_vm1, %v5334_v51  ;;  %v1565_v51 = vrot.slane %v1563_v38, 5  ;;  %v1611_v38 = vshll.u32 %v5708_v25, 16  ;;  %v1126_v58 = vsel %vm5526_vm4, %v1121_v1, %v5671_v53  ;;  %v5345_v53 = vld [vmem:[%s5493_s27 + $0x70] ss:$8 sps:$4 sm:$0xff]   ;;  %v1586_v3 = vsel %vm5526_vm4, %v5714_v34, %v5705_v24 }
  0x4c   : > { %4896 = vmatprep.mubr.msk.bf16.mxu0 %vm255_vm1, %v5335_v57  ;;  %v5669_v57 = vrot.slane %v1109_v7, 5  ;;  %v4405_v7 = vld [vmem:[%s5493_s27 + $0x30] sm:$0xf] }
  0x4d   : > { %v1566_v10 = vor.u32 %v1565_v51, %v1562_v50  ;;  %v1602_v23 = vshrl.u32 %v4405_v7, 16  ;;  %v1605_v27 = vshll.u32 %v4405_v7, 16 }
  0x4e   : > { %v1112_v39 = vsel %vm5526_vm4, %v5673_v59, %v5669_v57  ;;  %v5344_v57 = vld [vmem:[%s5493_s27 + $0x60] ss:$8 sps:$4 sm:$0xff]  }
  0x4f   : > { %v5710_v26 = vrot.slane %v1566_v10, 4  ;;  %v1604_v35 = vrot.slane %v1602_v23, 4  ;;  %v1607_v36 = vrot.slane %v1605_v27, 5  ;;  %v4356_v6 = vcombine.low %v1112_v39, %v1126_v58  ;;  %v5347_v59 = vld [vmem:[%s6322_s3] sm:$0xff]   ;;  %v5349_v27 = vld [vmem:[%s6322_s3 + $0x8] sm:$0xff]   ;;  %v5354_v39 = vld [vmem:[%s6322_s3 + $0x98] sm:$0xff]  }
  0x50   : > { %v1613_v10 = vrot.slane %v1611_v38, 5  ;;  %v1842_v38 = vsel %vm5815_vm9, 0, %v1841_v30  ;;  %v1821_v58 = vld [vmem:[#allocation3 + $0x38] sm:$0x1] }
  0x51   : > { %v1608_v63 = vor.u32 %v1607_v36, %v1604_v35  ;;  %v1803_v35 = vld [vmem:[#allocation3 + $0x8] sm:$0x1]  ;;  %v1835_v36 = vld [vmem:[#allocation3 + $0xc] sm:$0x1]  ;;  %1843 = vst [vmem:[#allocation3 + $0x1c] sm:$0x1] %v1842_v38 }
  0x53   : > { %4897 = vmatmul.mubr.msk.bf16.vlgmr.msra.gmra.mrb[0].mxu0 %vm255_vm1, %v5336_v33  ;;  %v1619_v33 = vshll.u32 %v4407_v18, 16  ;;  %v1609_v7 = vrot.slane %v1608_v63, 4 }
  0x54   : > { %4905 = vmatpush3.bf16.msra.mxu0 %v5581_v54  ;;  %4900 = vmatprep.mubr.msk.bf16.mxu0 %vm255_vm1, %v5337_v40  ;;  %v1042_v54 = vsel %vm5526_vm4, %v5633_v37, %v5623_v28  ;;  %v1597_v28 = vshll.u32 %v5689_v12, 16  ;;  %v4409_v37 = vld [vmem:[%s5493_s27 + $0x40] sm:$0xf]  ;;  %v1056_v40 = vsel %vm5526_vm4, %v5639_v42, %v5627_v32  ;;  %v4355_v42 = vcombine.low %v1084_v47, %v1098_v48  ;;  %v4410_v12 = vld [vmem:[%s5493_s27 + $0x44] sm:$0x1] }
  0x55   : > { %5310 = vmatprep.subr.msk.bf16.mxu0 %vm268_vm0, %v5590_v2  ;;  %v4353_v31 = vcombine.low %v1028_v14, %v1042_v54  ;;  %v1593_v2 = vrot.slane %v1591_v16, 5  ;;  %v1630_v45 = vshrl.u32 %v4409_v37, 16  ;;  %v1633_v43 = vshll.u32 %v4409_v37, 16  ;;  %v5351_v37 = vld [vmem:[%s6322_s3 + $0x10] sm:$0xff]   ;;  %v1844_v48 = vld [vmem:[#allocation3 + $0x24] sm:$0x1] }
  0x56   : > { %v1621_v50 = vrot.slane %v1619_v33, 5  ;;  %v4354_v32 = vcombine.low %v1056_v40, %v1070_v44  ;;  %v1639_v54 = vshll.u32 %v4410_v12, 16  ;;  %v1614_v16 = vsel %vm5526_vm4, %v1609_v7, %v1613_v10  ;;  %v5358_v12 = vld [vmem:[%s6322_s3 + $0xa8] sm:$0xff]  }
  0x57   : > { %v1632_v51 = vrot.slane %v1630_v45, 4  ;;  %v1635_v52 = vrot.slane %v1633_v43, 5  ;;  %v1594_v62 = vor.u32 %v1593_v2, %v1590_v29  ;;  %v1809_v2 = vld [vmem:[#allocation3 + $0x18] sm:$0x1]  ;;  %v1804_v40 = vsel %vm5808_vm8, 0, %v1803_v35  ;;  %v5352_v43 = vld [vmem:[%s6322_s3 + $0x90] sm:$0xff]  }
  0x58   : > { %v1641_v25 = vrot.slane %v1639_v54, 5  ;;  %v1810_v33 = vsel %vm5808_vm8, 0, %v1809_v2  ;;  %v1836_v44 = vsel %vm5815_vm9, 0, %v1835_v36  ;;  %v1812_v45 = vld [vmem:[#allocation3 + $0x20] sm:$0x1]  ;;  %v5361_v54 = vld [vmem:[%s6322_s3 + $0x38] sm:$0xff]  }
  0x59   : > { %v1595_v5 = vrot.slane %v1594_v62, 4  ;;  %v1636_v14 = vor.u32 %v1635_v52, %v1632_v51  ;;  %1811 = vst [vmem:[#allocation3 + $0x18] sm:$0x1] %v1810_v33  ;;  %1805 = vst [vmem:[#allocation3 + $0x8] sm:$0x1] %v1804_v40  ;;  %v1813_v47 = vsel %vm5808_vm8, 0, %v1812_v45 }
  0x5a   : > { %1837 = vst [vmem:[#allocation3 + $0xc] sm:$0x1] %v1836_v44  ;;  %1814 = vst [vmem:[#allocation3 + $0x20] sm:$0x1] %v1813_v47  ;;  %v1838_v51 = vld [vmem:[#allocation3 + $0x14] sm:$0x1] }
  0x5b   : > { %4901 = vmatmul.mubr.msk.bf16.gmra.mrb[4].mxu0 %vm255_vm1, %v5338_v13  ;;  %v1622_v13 = vor.u32 %v1621_v50, %v1618_v49  ;;  %v1637_v23 = vrot.slane %v1636_v14, 4  ;;  %v1806_v49 = vld [vmem:[#allocation3 + $0x10] sm:$0x1]  ;;  %v5353_v50 = vld [vmem:[%s6322_s3 + $0x18] sm:$0xff]   ;;  %v1839_v52 = vsel %vm5815_vm9, 0, %v1838_v51  ;;  %v5369_v29 = vld [vmem:[%s6322_s3 + $0xc8] sm:$0xff]  }
  0x5c   : > { %4906 = vmatprep.mubr.msk.bf16.mxu0 %vm255_vm1, %v4353_v31  ;;  %1840 = vst [vmem:[#allocation3 + $0x14] sm:$0x1] %v1839_v52  ;;  %v1856_v62 = vld [vmem:[#allocation3 + $0x44] sm:$0x1]  ;;  %v5360_v14 = vld [vmem:[%s6322_s3 + $0xb0] sm:$0xff]  }
  0x5d   : > { %v1623_v22 = vrot.slane %v1622_v13, 4  ;;  %v1642_v31 = vsel %vm5526_vm4, %v1637_v23, %v1641_v25  ;;  %v5905_v25 = vld [vmem:[%s6321_s2] ss:$0 sm:$0xff]  ;;  %v1992_v51 = vld [vmem:[#allocation3 + $0x1c] sm:$0x1] }
  0x63   : > { %4907 = vmatmul.mubr.msk.bf16.vlgmr.msra.gmra.mrb[0].mxu0 %vm255_vm1, %v4354_v32  ;;  %v1845_v32 = vsel %vm5815_vm9, 0, %v1844_v48 }
  0x64   : > { %4915 = vmatpush3.bf16.msra.mxu0 %v5608_v17  ;;  %4910 = vmatprep.mubr.msk.bf16.mxu0 %vm255_vm1, %v4355_v42  ;;  %v5340_v17 = vld [vmem:[%s5493_s27 + $0x18] ss:$8 sps:$4 sm:$0xff]   ;;  %v1807_v42 = vsel %vm5808_vm8, 0, %v1806_v49  ;;  %1846 = vst [vmem:[#allocation3 + $0x24] sm:$0x1] %v1845_v32 }
  0x65   : > { %5311 = vmatprep.subr.msk.bf16.mxu0 %vm268_vm0, %v5596_v4  ;;  %v5343_v4 = vld [vmem:[%s5493_s27 + $0x50] ss:$8 sps:$4 sm:$0xff]   ;;  %1808 = vst [vmem:[#allocation3 + $0x10] sm:$0x1] %v1807_v42 }
  0x66   : > { %v1989_v42 = vld [vmem:[#allocation3 + $0x18] sm:$0xf] }
  0x6b   : > { %4911 = vmatmul.mubr.msk.bf16.gmra.mrb[4].mxu0 %vm255_vm1, %v4356_v6  ;;  %v5439_v6 = vmov 0  }
  0x6c   : > { %4916 = vmatprep.mubr.msk.bf16.mxu0 %vm255_vm1, %v5339_v60  ;;  %v1853_v60 = vld [vmem:[#allocation3 + $0x3c] sm:$0x1]  ;;  %1792 = vst [vmem:[#allocation3] sm:$0xf] %v5439_v6  ;;  %1793 = vst [vmem:[#allocation3 + $0x4] sm:$0x1] %v5439_v6 }
  0x6d   : > { %1795 = vst [vmem:[#allocation3 + $0x48] sm:$0xf] %v5439_v6  ;;  %1796 = vst [vmem:[#allocation3 + $0x4c] sm:$0x1] %v5439_v6 }
  0x73   : > { %4917 = vmatmul.mubr.msk.bf16.vlgmr.msra.gmra.mrb[0].mxu0 %vm255_vm1, %v5340_v17  ;;  %v1822_v17 = vsel %vm5808_vm8, 0, %v1821_v58  ;;  %v1800_v63 = vld [vmem:[#allocation3] sm:$0x1] }
  0x74   : > { %4925 = vmatpush3.bf16.msra.mxu0 %v5614_v20  ;;  %4920 = vmatprep.mubr.msk.bf16.mxu0 %vm255_vm1, %v5341_v55  ;;  %v1544_v20 = vsel %vm5526_vm4, %v5684_v8, %v5677_v46  ;;  %v1572_v46 = vsel %vm5526_vm4, %v5710_v26, %v5686_v11  ;;  %v1625_v8 = vshll.u32 %v4408_v0, 16  ;;  %v1854_v55 = vsel %vm5815_vm9, 0, %v1853_v60  ;;  %1823 = vst [vmem:[#allocation3 + $0x38] sm:$0x1] %v1822_v17  ;;  %v1977_v17 = vld [vmem:[#allocation3 + $0x8] sm:$0xf] }
  0x75   : > { %5312 = vmatprep.subr.msk.bf16.mxu0 %vm268_vm0, %v5601_v9  ;;  %v5346_v9 = vld [vmem:[%s5493_s27 + $0x80] ss:$8 sps:$4 sm:$0xff]   ;;  %v4412_v1 = vcombine.low %v1544_v20, %v1558_v61  ;;  %v4413_v18 = vcombine.low %v1572_v46, %v1586_v3  ;;  %1855 = vst [vmem:[#allocation3 + $0x3c] sm:$0x1] %v1854_v55  ;;  %v5359_v46 = vld [vmem:[%s6322_s3 + $0x30] sm:$0xff]  }
  0x76   : > { %v1627_v19 = vrot.slane %v1625_v8, 5  ;;  %v5357_v20 = vld [vmem:[%s6322_s3 + $0x28] sm:$0xff]   ;;  %v1824_v61 = vld [vmem:[#allocation3 + $0x40] sm:$0x1]  ;;  %v1801_v8 = vsel %vm5808_vm8, 0, %v1800_v63 }
  0x77   : > { %v1825_v0 = vsel %vm5808_vm8, 0, %v1824_v61  ;;  %1802 = vst [vmem:[#allocation3] sm:$0x1] %v1801_v8  ;;  %v1832_v3 = vld [vmem:[#allocation3 + $0x4] sm:$0x1] }
  0x78   : > { %v1628_v24 = vsel %vm5526_vm4, %v1623_v22, %v1627_v19  ;;  %1826 = vst [vmem:[#allocation3 + $0x40] sm:$0x1] %v1825_v0  ;;  %v1833_v13 = vsel %vm5815_vm9, 0, %v1832_v3  ;;  %v1827_v19 = vld [vmem:[#allocation3 + $0x48] sm:$0x1] }
  0x79   : > { %v4415_v26 = vcombine.low %v1628_v24, %v1642_v31  ;;  %1834 = vst [vmem:[#allocation3 + $0x4] sm:$0x1] %v1833_v13  ;;  %v1859_v22 = vld [vmem:[#allocation3 + $0x4c] sm:$0x1]  ;;  %v1998_v8 = vld [vmem:[#allocation3 + $0x24] sm:$0x1] }
  0x7a   : > { %v1860_v23 = vsel %vm5815_vm9, 0, %v1859_v22  ;;  %v1986_v22 = vld [vmem:[#allocation3 + $0x14] sm:$0x1]  ;;  %v3946_v41 = vld [vmem:[#allocation3 + $0x48] sm:$0xe] }
  0x7b   : > { %4921 = vmatmul.mubr.msk.bf16.gmra.mrb[4].mxu0 %vm255_vm1, %v5342_v56  ;;  %v5355_v56 = vld [vmem:[%s6322_s3 + $0x20] sm:$0xff]   ;;  %1861 = vst [vmem:[#allocation3 + $0x4c] sm:$0x1] %v1860_v23 }
  0x7c   : > { %4926 = vmatprep.mubr.msk.bf16.mxu0 %vm255_vm1, %v5343_v4  ;;  %v1815_v4 = vld [vmem:[#allocation3 + $0x28] sm:$0x1] }
  0x7e   : > { %v5910_v33 = vld [vmem:[#allocation3] sm:$0xf] }
  0x7f   : > { %v2214_v49 = vshll.u32 %v5910_v33, 16 }
  0x80   : > { %v5913_v36 = vld [vmem:[#allocation3 + $0x4] sm:$0x1] }
  0x83   : > { %4927 = vmatmul.mubr.msk.bf16.vlgmr.msra.gmra.mrb[0].mxu0 %vm255_vm1, %v5344_v57  ;;  %v1847_v57 = vld [vmem:[#allocation3 + $0x2c] sm:$0x1] }
  0x84   : > { %4935 = vmatpush3.bf16.msra.mxu0 %v5618_v21  ;;  %4930 = vmatprep.mubr.msk.bf16.mxu0 %vm255_vm1, %v5345_v53  ;;  %v1599_v21 = vrot.slane %v1597_v28, 5  ;;  %v5350_v28 = vld [vmem:[%s6322_s3 + $0x88] sm:$0xff]   ;;  %v1816_v53 = vsel %vm5808_vm8, 0, %v1815_v4 }
  0x85   : > { %4944 = vmatprep.subr.bf16.mxu0 %v5347_v59  ;;  %4994 = vmatprep.subr.bf16.mxu1 %v5350_v28  ;;  %1817 = vst [vmem:[#allocation3 + $0x28] sm:$0x1] %v1816_v53 }
  0x86   : > { %v1600_v15 = vsel %vm5526_vm4, %v1595_v5, %v1599_v21  ;;  %4995 = vmatpush3.bf16.msra.mxu1 %v5350_v28  ;;  %v1818_v5 = vld [vmem:[#allocation3 + $0x30] sm:$0x1]  ;;  %v1850_v21 = vld [vmem:[#allocation3 + $0x34] sm:$0x1] }
  0x87   : > { %v4414_v11 = vcombine.low %v1600_v15, %v1614_v16  ;;  %4996 = vmatprep.subr.bf16.mxu1 %v5352_v43  ;;  %v1819_v7 = vsel %vm5808_vm8, 0, %v1818_v5  ;;  %v1851_v10 = vsel %vm5815_vm9, 0, %v1850_v21  ;;  %v5363_v15 = vld [vmem:[%s6322_s3 + $0xb8] sm:$0xff]   ;;  %v5889_v16 = vld [vmem:[%s6322_s3 + $0x40] sm:$0xff]  }
  0x88   : > { %1820 = vst [vmem:[#allocation3 + $0x30] sm:$0x1] %v1819_v7  ;;  %1852 = vst [vmem:[#allocation3 + $0x34] sm:$0x1] %v1851_v10  ;;  %v1995_v21 = vld [vmem:[#allocation3 + $0x20] sm:$0xf] }
  0x8a   : > { %4997 = vmatpush3.bf16.msra.mxu1 %v5352_v43  ;;  %v2211_v43 = vshrl.u32 %v5910_v33, 16  ;;  %v5968_v33 = vld [vmem:[%s6322_s3 + $0x48] sm:$0xff]  }
  0x8b   : > { %4931 = vmatmul.mubr.msk.bf16.gmra.mrb[4].mxu0 %vm255_vm1, %v5346_v9  ;;  %4998 = vmatprep.subr.bf16.mxu1 %v5354_v39  ;;  %v5356_v9 = vld [vmem:[%s6322_s3 + $0xa0] sm:$0xff]  }
  0x8c   : > { %4936 = vmatprep.mubr.msk.bf16.mxu0 %vm255_vm1, %v4412_v1  ;;  %v1857_v1 = vsel %vm5815_vm9, 0, %v1856_v62 }
  0x8d   : > { %1858 = vst [vmem:[#allocation3 + $0x44] sm:$0x1] %v1857_v1 }
  0x8e   : > { %4999 = vmatpush3.bf16.msra.mxu1 %v5354_v39 }
  0x8f   : > { %5000 = vmatprep.subr.bf16.mxu1 %v5356_v9 }
  0x92   : > { %5001 = vmatpush3.bf16.msra.mxu1 %v5356_v9  ;;  %v1980_v9 = vld [vmem:[#allocation3 + $0xc] sm:$0x1] }
  0x93   : > { %4937 = vmatmul.mubr.msk.bf16.vlgmr.msra.gmra.mrb[0].mxu0 %vm255_vm1, %v4413_v18  ;;  %5002 = vmatprep.subr.bf16.mxu1 %v5358_v12  ;;  %v5895_v18 = vld [vmem:[%s6322_s3 + $0xc0] sm:$0xff]  }
  0x94   : > { %4940 = vmatprep.mubr.msk.bf16.mxu0 %vm255_vm1, %v4414_v11  ;;  %4945 = vmatpush3.bf16.msra.mxu0 %v5347_v59  ;;  %v1848_v59 = vsel %vm5815_vm9, 0, %v1847_v57  ;;  %v1828_v11 = vsel %vm5808_vm8, 0, %v1827_v19 }
  0x95   : > { %4946 = vmatprep.subr.bf16.mxu0 %v5349_v27  ;;  %1849 = vst [vmem:[#allocation3 + $0x2c] sm:$0x1] %v1848_v59  ;;  %1829 = vst [vmem:[#allocation3 + $0x48] sm:$0x1] %v1828_v11  ;;  %v1983_v11 = vld [vmem:[#allocation3 + $0x10] sm:$0xf] }
  0x96   : > { %5003 = vmatpush3.bf16.msra.mxu1 %v5358_v12 }
  0x97   : > { %5004 = vmatprep.subr.bf16.mxu1 %v5360_v14 }
  0x98   : > { %4947 = vmatpush3.bf16.msra.mxu0 %v5349_v27 }
  0x99   : > { %4948 = vmatprep.subr.bf16.mxu0 %v5351_v37 }
  0x9a   : > { %5005 = vmatpush3.bf16.msra.mxu1 %v5360_v14 }
  0x9b   : > { %4941 = vmatmul.mubr.msk.bf16.gmra.mrb[4].mxu0 %vm255_vm1, %v4415_v26  ;;  %5006 = vmatprep.subr.bf16.mxu1 %v5363_v15 }
  0x9c   : > { %4949 = vmatpush3.bf16.msra.mxu0 %v5351_v37 }
  0x9d   : > { %4950 = vmatprep.subr.bf16.mxu0 %v5353_v50 }
  0x9e   : > { %5007 = vmatpush3.bf16.msra.mxu1 %v5363_v15 }
  0x9f   : > { %5016 = vmatprep.subr.bf16.mxu1 %v5895_v18 }
  0xa0   : > { %4951 = vmatpush3.bf16.msra.mxu0 %v5353_v50  ;;  %v2220_v50 = vshll.u32 %v5913_v36, 16 }
  0xa1   : > { %4952 = vmatprep.subr.bf16.mxu0 %v5355_v56 }
  0xa4   : > { %4953 = vmatpush3.bf16.msra.mxu0 %v5355_v56 }
  0xa5   : > { %4954 = vmatprep.subr.bf16.mxu0 %v5357_v20 }
  0xa8   : > { %4955 = vmatpush3.bf16.msra.mxu0 %v5357_v20 }
  0xa9   : > { %4956 = vmatprep.subr.bf16.mxu0 %v5359_v46 }
  0xac   : > { %4957 = vmatpush3.bf16.msra.mxu0 %v5359_v46 }
  0xad   : > { %4958 = vmatprep.subr.bf16.mxu0 %v5361_v54 }
  0xb0   : > { %4959 = vmatpush3.bf16.msra.mxu0 %v5361_v54 }
  0xb1   : > { %4968 = vmatprep.subr.bf16.mxu0 %v5889_v16 }
 0x166   : > { %v4938_v27 = vpop.f32.mrb[0].mxu0 }
 0x167   : > { %v1778_v24 = vadd.f32 %v4938_v27, %v5905_v25  ;;  %v1706_v31 = vpop.f32.mrb[1].mxu0 }
 0x168   : > { %v1776_v26 = vadd.f32 %v5905_v25, %v1706_v31  ;;  %v4939_v28 = vpop.f32.mrb[2].mxu0 }
 0x169   : > { %v1786_v37 = vmax.f32 %v1778_v24, 0.0  ;;  %v1779_v2 = vadd.f32 %v4939_v28, %v5905_v25  ;;  %v1709_v30 = vpop.f32.mrb[3].mxu0 }
 0x16a   : > { %v1784_v34 = vmax.f32 %v1776_v26, 0.0  ;;  %v1777_v35 = vadd.f32 %v5905_v25, %v1709_v30  ;;  %v5934_v26 = vld [vmem:[#allocation3] sm:$0xe] }
 0x16b   : > { %v4695_v38 = vpack.c.bf16 %v1786_v37, %v1786_v37  ;;  %v1787_v40 = vmax.f32 %v1779_v2, 0.0 }
 0x16c   : > { %v4693_v44 = vpack.c.bf16 %v1784_v34, %v1784_v34  ;;  %v1785_v45 = vmax.f32 %v1777_v35, 0.0  ;;  %v2493_v34 = vld [vmem:[#allocation3 + $0x4] sm:$0x1] }
 0x16d   : > { %v1911_v47 = vshrl.u32 %v4695_v38, 16  ;;  %v4696_v48 = vpack.c.bf16 %v1787_v40, %v1787_v40  ;;  %v1914_v32 = vshll.u32 %v4695_v38, 16 }
 0x16e   : > { %v1895_v52 = vshrl.u32 %v4693_v44, 16  ;;  %v1898_v39 = vshll.u32 %v4693_v44, 16  ;;  %v4694_v58 = vpack.c.bf16 %v1785_v45, %v1785_v45  ;;  %v4942_v60 = vpop.f32.mrb[4].mxu0 }
 0x16f   : > { %v1913_v6 = vrot.slane %v1911_v47, 7  ;;  %v1919_v55 = vshrl.u32 %v4696_v48, 16  ;;  %v1922_v56 = vshll.u32 %v4696_v48, 16  ;;  %v1782_v4 = vadd.f32 %v4942_v60, %v5905_v25  ;;  %v1722_v57 = vpop.f32.mrb[5].mxu0 }
 0x170   : > { %v1897_v59 = vrot.slane %v1895_v52, 7  ;;  %v1903_v20 = vshrl.u32 %v4694_v58, 16  ;;  %v1906_v61 = vshll.u32 %v4694_v58, 16  ;;  %v1780_v62 = vadd.f32 %v5905_v25, %v1722_v57  ;;  %v4943_v63 = vpop.f32.mrb[6].mxu0 }
 0x171   : > { %v1916_v0 = vor.u32 %v1914_v32, %v1913_v6  ;;  %v1917_v1 = vrot.slane %v1913_v6, 4  ;;  %v1921_v5 = vrot.slane %v1919_v55, 7  ;;  %v1790_v7 = vmax.f32 %v1782_v4, 0.0  ;;  %v1725_v10 = vpop.f32.mrb[7].mxu0  ;;  %v2013_v32 = vld [vmem:[#allocation3 + $0x38] sm:$0xf] }
 0x172   : > { %v1900_v12 = vor.u32 %v1898_v39, %v1897_v59  ;;  %v1901_v46 = vrot.slane %v1897_v59, 4  ;;  %v1905_v3 = vrot.slane %v1903_v20, 7  ;;  %v1788_v13 = vmax.f32 %v1780_v62, 0.0  ;;  %v2016_v6 = vld [vmem:[#allocation3 + $0x3c] sm:$0x1] }
 0x173   : > { %v1990_v14 = vsel %vm5921_vm11, %v1916_v0, %v1989_v42  ;;  %v1993_v54 = vsel %vm5808_vm8, %v1917_v1, %v1992_v51  ;;  %v1924_v15 = vor.u32 %v1922_v56, %v1921_v5  ;;  %v1925_v19 = vrot.slane %v1921_v5, 4  ;;  %v2001_v55 = vld [vmem:[#allocation3 + $0x28] sm:$0xf]  ;;  %v2004_v56 = vld [vmem:[#allocation3 + $0x2c] sm:$0x1] }
 0x174   : > { %1991 = vst [vmem:[#allocation3 + $0x18] sm:$0xf] %v1990_v14  ;;  %1994 = vst [vmem:[#allocation3 + $0x1c] sm:$0x1] %v1993_v54  ;;  %v1978_v23 = vsel %vm5921_vm11, %v1900_v12, %v1977_v17  ;;  %v1981_v27 = vsel %vm5808_vm8, %v1901_v46, %v1980_v9  ;;  %v1908_v24 = vor.u32 %v1906_v61, %v1905_v3  ;;  %v1909_v31 = vrot.slane %v1905_v3, 4 }
 0x175   : > { %1979 = vst [vmem:[#allocation3 + $0x8] sm:$0xf] %v1978_v23  ;;  %1982 = vst [vmem:[#allocation3 + $0xc] sm:$0x1] %v1981_v27  ;;  %v1996_v28 = vsel %vm5921_vm11, %v1924_v15, %v1995_v21  ;;  %v1999_v37 = vsel %vm5808_vm8, %v1925_v19, %v1998_v8  ;;  %v4699_v2 = vpack.c.bf16 %v1790_v7, %v1790_v7  ;;  %v4469_v48 = vrot.slane %v5934_v26, 9 }
 0x176   : > { %v4697_v30 = vpack.c.bf16 %v1788_v13, %v1788_v13  ;;  %1997 = vst [vmem:[#allocation3 + $0x20] sm:$0xf] %v1996_v28  ;;  %2000 = vst [vmem:[#allocation3 + $0x24] sm:$0x1] %v1999_v37  ;;  %v1984_v35 = vsel %vm5921_vm11, %v1908_v24, %v1983_v11  ;;  %v1987_v38 = vsel %vm5808_vm8, %v1909_v31, %v1986_v22  ;;  %v2529_v52 = vrot.slane %v2493_v34, 5 }
 0x177   : > { %v1783_v40 = vadd.f32 %v4943_v63, %v5905_v25  ;;  %v1781_v44 = vadd.f32 %v5905_v25, %v1725_v10  ;;  %1985 = vst [vmem:[#allocation3 + $0x10] sm:$0xf] %v1984_v35  ;;  %1988 = vst [vmem:[#allocation3 + $0x14] sm:$0x1] %v1987_v38  ;;  %v1943_v45 = vshrl.u32 %v4699_v2, 16  ;;  %v5949_v39 = vrot.slane %v2211_v43, 4 }
 0x178   : > { %v1927_v47 = vshrl.u32 %v4697_v30, 16  ;;  %v1946_v60 = vshll.u32 %v4699_v2, 16  ;;  %v1930_v25 = vshll.u32 %v4697_v30, 16  ;;  %v5953_v59 = vrot.slane %v2214_v49, 5  ;;  %v2019_v12 = vld [vmem:[#allocation3 + $0x40] sm:$0xf] }
 0x179   : > { %v1791_v42 = vmax.f32 %v1783_v40, 0.0  ;;  %v1789_v51 = vmax.f32 %v1781_v44, 0.0  ;;  %v1945_v58 = vrot.slane %v1943_v45, 7  ;;  %v5957_v9 = vrot.slane %v2220_v50, 5  ;;  %v2022_v46 = vld [vmem:[#allocation3 + $0x44] sm:$0x1] }
 0x17a   : > { %v1929_v17 = vrot.slane %v1927_v47, 7  ;;  %v2007_v8 = vld [vmem:[#allocation3 + $0x30] sm:$0xf]  ;;  %v2010_v3 = vld [vmem:[#allocation3 + $0x34] sm:$0x1]  ;;  %v2530_v22 = vsel %vm5961_vm14, %v4469_v48, %v2529_v52  ;;  %v2217_v26 = vor.u32 %v5953_v59, %v5949_v39 }
 0x17b   : > { %v4700_v4 = vpack.c.bf16 %v1791_v42, %v1791_v42  ;;  %v4698_v57 = vpack.c.bf16 %v1789_v51, %v1789_v51  ;;  %v1948_v20 = vor.u32 %v1946_v60, %v1945_v58  ;;  %v1949_v43 = vrot.slane %v1945_v58, 4  ;;  %v5970_v36 = vld [vmem:[#allocation3 + $0x18] sm:$0xe]  ;;  %v2499_v34 = vld [vmem:[#allocation3 + $0x1c] sm:$0x1]  ;;  %v5370_v45 = vld [vmem:[%s6322_s3 + $0x50] sm:$0xff]  }
 0x17c   : > { %v1932_v61 = vor.u32 %v1930_v25, %v1929_v17  ;;  %v1933_v62 = vrot.slane %v1929_v17, 4  ;;  %v5362_v13 = vld [vmem:[#allocation3] ss:$8 sps:$4 sm:$0xff]   ;;  %v2495_v54 = vld [vmem:[#allocation3 + $0xc] sm:$0x1]  ;;  %v4472_v44 = vrot.slane %v5970_v36, 9 }
 0x17d   : > { %v1951_v63 = vshrl.u32 %v4700_v4, 16  ;;  %v1954_v0 = vshll.u32 %v4700_v4, 16  ;;  %v1935_v1 = vshrl.u32 %v4698_v57, 16  ;;  %v1938_v5 = vshll.u32 %v4698_v57, 16  ;;  %v2494_v14 = vld [vmem:[#allocation3 + $0x8] sm:$0xe]  ;;  %4960 = vmatprep.mubr.bf16.mxu0 %v5362_v13 }
 0x17e   : > { %v2014_v49 = vsel %vm5921_vm11, %v1948_v20, %v2013_v32  ;;  %v2017_v50 = vsel %vm5808_vm8, %v1949_v43, %v2016_v6  ;;  %v2002_v7 = vsel %vm5921_vm11, %v1932_v61, %v2001_v55  ;;  %v2005_v10 = vsel %vm5808_vm8, %v1933_v62, %v2004_v56  ;;  %v5365_v11 = vld [vmem:[#allocation3 + $0x10] ss:$8 sps:$4 sm:$0xff]   ;;  %v2497_v31 = vld [vmem:[#allocation3 + $0x14] sm:$0x1]  ;;  %v2196_v47 = vld [vmem:[#allocation3 + $0x8] sm:$0xf] }
 0x17f   : > { %2015 = vst [vmem:[#allocation3 + $0x38] sm:$0xf] %v2014_v49  ;;  %2018 = vst [vmem:[#allocation3 + $0x3c] sm:$0x1] %v2017_v50  ;;  %v1953_v15 = vrot.slane %v1951_v63, 7  ;;  %v1937_v19 = vrot.slane %v1935_v1, 7  ;;  %4961 = vmatmul.mubr.bf16.vlgmr.msra.gmra.mrb[8].mxu0 %v5365_v11 }
 0x180   : > { %2003 = vst [vmem:[#allocation3 + $0x28] sm:$0xf] %v2002_v7  ;;  %2006 = vst [vmem:[#allocation3 + $0x2c] sm:$0x1] %v2005_v10  ;;  %v4470_v23 = vrot.slane %v2494_v14, 9  ;;  %v2533_v27 = vrot.slane %v2495_v54, 5  ;;  %4969 = vmatpush3.bf16.msra.mxu0 %v5889_v16 }
 0x181   : > { %v2496_v24 = vld [vmem:[#allocation3 + $0x10] sm:$0xe]  ;;  %v1956_v28 = vor.u32 %v1954_v0, %v1953_v15  ;;  %v1957_v37 = vrot.slane %v1953_v15, 4  ;;  %v1940_v2 = vor.u32 %v1938_v5, %v1937_v19  ;;  %v1941_v30 = vrot.slane %v1937_v19, 4  ;;  %4970 = vmatprep.subr.bf16.mxu0 %v5968_v33  ;;  %v2197_v51 = vld [vmem:[#allocation3 + $0xc] sm:$0x1] }
 0x182   : > { %v2534_v35 = vsel %vm5961_vm14, %v4470_v23, %v2533_v27  ;;  %v4471_v38 = vrot.slane %v2496_v24, 9  ;;  %v2537_v40 = vrot.slane %v2497_v31, 5  ;;  %v2500_v52 = vld [vmem:[#allocation3 + $0x20] sm:$0xe]  ;;  %v2501_v39 = vld [vmem:[#allocation3 + $0x24] sm:$0x1] }
 0x183   : > { %v2020_v48 = vsel %vm5921_vm11, %v1956_v28, %v2019_v12  ;;  %v2023_v32 = vsel %vm5808_vm8, %v1957_v37, %v2022_v46  ;;  %v2008_v16 = vsel %vm5921_vm11, %v1940_v2, %v2007_v8  ;;  %v2011_v42 = vsel %vm5808_vm8, %v1941_v30, %v2010_v3  ;;  %v5373_v63 = vld [vmem:[%s6322_s3 + $0x58] sm:$0xff]   ;;  %v5372_v10 = vld [vmem:[%s6322_s3 + $0xd0] sm:$0xff]   ;;  %v5376_v46 = vld [vmem:[%s6322_s3 + $0x60] sm:$0xff]  }
 0x184   : > { %2021 = vst [vmem:[#allocation3 + $0x40] sm:$0xf] %v2020_v48  ;;  %2024 = vst [vmem:[#allocation3 + $0x44] sm:$0x1] %v2023_v32  ;;  %v4493_v58 = vcombine.low %v2530_v22, %v2534_v35  ;;  %v2538_v60 = vsel %vm5961_vm14, %v4471_v38, %v2537_v40  ;;  %v2541_v6 = vrot.slane %v2499_v34, 5  ;;  %v2225_v17 = vshrl.u32 %v2196_v47, 16  ;;  %4971 = vmatpush3.bf16.msra.mxu0 %v5968_v33 }
 0x185   : > { %2009 = vst [vmem:[#allocation3 + $0x30] sm:$0xf] %v2008_v16  ;;  %2012 = vst [vmem:[#allocation3 + $0x34] sm:$0x1] %v2011_v42  ;;  %v2218_v53 = vrot.slane %v2217_v26, 4  ;;  %v2228_v25 = vshll.u32 %v2196_v47, 16  ;;  %4972 = vmatprep.subr.bf16.mxu0 %v5370_v45 }
 0x186   : > { %v2234_v55 = vshll.u32 %v2197_v51, 16  ;;  %v4473_v56 = vrot.slane %v2500_v52, 9  ;;  %5008 = vmatprep.mubr.bf16.mxu1 %v4493_v58  ;;  %v2542_v4 = vsel %vm5961_vm14, %v4472_v44, %v2541_v6  ;;  %v2227_v20 = vrot.slane %v2225_v17, 4  ;;  %v2506_v5 = vld [vmem:[#allocation3 + $0x38] sm:$0xe]  ;;  %v5377_v58 = vld [vmem:[%s6322_s3 + $0xe0] sm:$0xff]  }
 0x187   : > { %v5368_v57 = vld [vmem:[#allocation3 + $0x20] ss:$8 sps:$4 sm:$0xff]   ;;  %v4494_v59 = vcombine.low %v2538_v60, %v2542_v4  ;;  %v2230_v43 = vrot.slane %v2228_v25, 5  ;;  %v2545_v62 = vrot.slane %v2501_v39, 5  ;;  %v2503_v0 = vld [vmem:[#allocation3 + $0x2c] sm:$0x1]  ;;  %v2223_v33 = vsel %vm5526_vm4, %v2218_v53, %v5957_v9 }
 0x188   : > { %v2502_v61 = vld [vmem:[#allocation3 + $0x28] sm:$0xe]  ;;  %4964 = vmatprep.mubr.bf16.mxu0 %v5368_v57  ;;  %v2549_v49 = vrot.slane %v2503_v0, 5  ;;  %v2507_v50 = vld [vmem:[#allocation3 + $0x3c] sm:$0x1]  ;;  %4973 = vmatpush3.bf16.msra.mxu0 %v5370_v45  ;;  %v2236_v7 = vrot.slane %v2234_v55, 5 }
 0x189   : > { %v4474_v1 = vrot.slane %v2502_v61, 9  ;;  %5009 = vmatmul.mubr.bf16.vlgmr.msra.gmra.mrb[0].mxu1 %v4494_v59  ;;  %v2231_v36 = vor.u32 %v2230_v43, %v2227_v20  ;;  %v4476_v12 = vrot.slane %v2506_v5, 9  ;;  %v2198_v8 = vld [vmem:[#allocation3 + $0x10] sm:$0xf]  ;;  %4974 = vmatprep.subr.bf16.mxu0 %v5373_v63  ;;  %v2557_v14 = vrot.slane %v2507_v50, 5  ;;  %v5375_v40 = vld [vmem:[%s6322_s3 + $0xd8] sm:$0xff]  }
 0x18a   : > { %5017 = vmatpush3.bf16.msra.mxu1 %v5895_v18  ;;  %v2546_v18 = vsel %vm5961_vm14, %v4473_v56, %v2545_v62  ;;  %v2200_v11 = vld [vmem:[#allocation3 + $0x18] sm:$0xf]  ;;  %v2239_v31 = vshrl.u32 %v2198_v8, 16  ;;  %v2242_v26 = vshll.u32 %v2198_v8, 16  ;;  %v2202_v28 = vld [vmem:[#allocation3 + $0x20] sm:$0xf] }
 0x18b   : > { %5018 = vmatprep.subr.bf16.mxu1 %v5369_v29  ;;  %v2232_v13 = vrot.slane %v2231_v36, 4  ;;  %v2550_v9 = vsel %vm5961_vm14, %v4474_v1, %v2549_v49  ;;  %v2558_v2 = vsel %vm5961_vm14, %v4476_v12, %v2557_v14  ;;  %v2253_v30 = vshrl.u32 %v2200_v11, 16  ;;  %v2204_v35 = vld [vmem:[#allocation3 + $0x28] sm:$0xf]  ;;  %v5380_v60 = vld [vmem:[%s6322_s3 + $0x70] sm:$0xff]   ;;  %v5382_v49 = vld [vmem:[%s6322_s3 + $0x78] sm:$0xff]  }
 0x18c   : > { %v5371_v3 = vld [vmem:[#allocation3 + $0x30] ss:$8 sps:$4 sm:$0xff]   ;;  %v4495_v54 = vcombine.low %v2546_v18, %v2550_v9  ;;  %v2505_v19 = vld [vmem:[#allocation3 + $0x34] sm:$0x1]  ;;  %4975 = vmatpush3.bf16.msra.mxu0 %v5373_v63  ;;  %v2256_v34 = vshll.u32 %v2200_v11, 16  ;;  %v5378_v45 = vld [vmem:[%s6322_s3 + $0x68] sm:$0xff]  }
 0x18d   : > { %v2504_v15 = vld [vmem:[#allocation3 + $0x30] sm:$0xe]  ;;  %4965 = vmatmul.mubr.bf16.gmra.mrb[12].mxu0 %v5371_v3  ;;  %v2237_v22 = vsel %vm5526_vm4, %v2232_v13, %v2236_v7  ;;  %v2553_v27 = vrot.slane %v2505_v19, 5  ;;  %4976 = vmatprep.subr.bf16.mxu0 %v5376_v46  ;;  %v2267_v47 = vshrl.u32 %v2202_v28, 16  ;;  %v2270_v48 = vshll.u32 %v2202_v28, 16  ;;  %v5379_v62 = vld [vmem:[%s6322_s3 + $0xe8] sm:$0xff]  }
 0x18e   : > { %v4475_v23 = vrot.slane %v2504_v15, 9  ;;  %5019 = vmatpush3.bf16.msra.mxu1 %v5369_v29  ;;  %v4457_v24 = vcombine.low %v2223_v33, %v2237_v22  ;;  %5012 = vmatprep.mubr.bf16.mxu1 %v4495_v54  ;;  %v5374_v44 = vld [vmem:[#allocation3 + $0x8] ss:$8 sps:$4 sm:$0xff]   ;;  %v2241_v32 = vrot.slane %v2239_v31, 4  ;;  %v2244_v16 = vrot.slane %v2242_v26, 5  ;;  %v6055_v14 = vld [vmem:[%s6322_s3 + $0x200] sm:$0xff]  }
 0x18f   : > { %5020 = vmatprep.subr.bf16.mxu1 %v5372_v10  ;;  %v2281_v42 = vshrl.u32 %v2204_v35, 16  ;;  %v2284_v51 = vshll.u32 %v2204_v35, 16  ;;  %v2255_v52 = vrot.slane %v2253_v30, 4  ;;  %v2258_v39 = vrot.slane %v2256_v34, 5  ;;  %v2199_v25 = vld [vmem:[#allocation3 + $0x14] sm:$0x1] }
 0x190   : > { %v2554_v37 = vsel %vm5961_vm14, %v4475_v23, %v2553_v27  ;;  %4984 = vmatprep.mubr.bf16.mxu0 %v4457_v24  ;;  %4977 = vmatpush3.bf16.msra.mxu0 %v5376_v46  ;;  %v2269_v6 = vrot.slane %v2267_v47, 4  ;;  %v2272_v17 = vrot.slane %v2270_v48, 5  ;;  %v2205_v55 = vld [vmem:[#allocation3 + $0x2c] sm:$0x1]  ;;  %v2206_v56 = vld [vmem:[#allocation3 + $0x30] sm:$0xf]  ;;  %v2245_v4 = vor.u32 %v2244_v16, %v2241_v32 }
 0x191   : > { %v4496_v38 = vcombine.low %v2554_v37, %v2558_v2  ;;  %v2283_v29 = vrot.slane %v2281_v42, 4  ;;  %v2286_v53 = vrot.slane %v2284_v51, 5  ;;  %4978 = vmatprep.subr.bf16.mxu0 %v5378_v45  ;;  %v2208_v57 = vld [vmem:[#allocation3 + $0x38] sm:$0xf]  ;;  %v2201_v59 = vld [vmem:[#allocation3 + $0x1c] sm:$0x1]  ;;  %v2259_v0 = vor.u32 %v2258_v39, %v2255_v52 }
 0x192   : > { %5021 = vmatpush3.bf16.msra.mxu1 %v5372_v10  ;;  %v2295_v43 = vshrl.u32 %v2206_v56, 16  ;;  %v2298_v61 = vshll.u32 %v2206_v56, 16  ;;  %v2248_v63 = vshll.u32 %v2199_v25, 16  ;;  %v2203_v1 = vld [vmem:[#allocation3 + $0x24] sm:$0x1]  ;;  %v2273_v5 = vor.u32 %v2272_v17, %v2269_v6  ;;  %v5381_v13 = vld [vmem:[%s6322_s3 + $0xf0] sm:$0xff]  }
 0x193   : > { %5013 = vmatmul.mubr.bf16.gmra.mrb[4].mxu1 %v4496_v38  ;;  %5022 = vmatprep.subr.bf16.mxu1 %v5375_v40  ;;  %v2287_v20 = vor.u32 %v2286_v53, %v2283_v29  ;;  %v2290_v36 = vshll.u32 %v2205_v55, 16  ;;  %v2309_v50 = vshrl.u32 %v2208_v57, 16  ;;  %v2312_v33 = vshll.u32 %v2208_v57, 16  ;;  %v2915_v22 = vld [vmem:[#allocation3 + $0x8] sm:$0xf]  ;;  %v5383_v30 = vld [vmem:[%s6322_s3 + $0xf8] sm:$0xff]  }
 0x194   : > { %5032 = vmatprep.mubr.bf16.mxu1 %v5374_v44  ;;  %4979 = vmatpush3.bf16.msra.mxu0 %v5378_v45  ;;  %v2246_v7 = vrot.slane %v2245_v4, 4  ;;  %v2262_v10 = vshll.u32 %v2201_v59, 16  ;;  %v2276_v12 = vshll.u32 %v2203_v1, 16  ;;  %v2297_v8 = vrot.slane %v2295_v43, 4  ;;  %v2917_v23 = vld [vmem:[#allocation3 + $0x10] sm:$0xf] }
 0x195   : > { %4980 = vmatprep.subr.bf16.mxu0 %v5380_v60  ;;  %v2288_v46 = vrot.slane %v2287_v20, 4  ;;  %v2300_v3 = vrot.slane %v2298_v61, 5  ;;  %v2250_v18 = vrot.slane %v2248_v63, 5  ;;  %v2260_v9 = vrot.slane %v2259_v0, 4  ;;  %v2207_v31 = vld [vmem:[#allocation3 + $0x34] sm:$0x1] }
 0x196   : > { %5023 = vmatpush3.bf16.msra.mxu1 %v5375_v40  ;;  %v2274_v54 = vrot.slane %v2273_v5, 4  ;;  %v2292_v15 = vrot.slane %v2290_v36, 5  ;;  %v2311_v19 = vrot.slane %v2309_v50, 4  ;;  %v2314_v11 = vrot.slane %v2312_v33, 5  ;;  %v2209_v35 = vld [vmem:[#allocation3 + $0x3c] sm:$0x1] }
 0x197   : > { %5024 = vmatprep.subr.bf16.mxu1 %v5377_v58  ;;  %v2251_v27 = vsel %vm5526_vm4, %v2246_v7, %v2250_v18  ;;  %v2264_v24 = vrot.slane %v2262_v10, 5  ;;  %v2278_v26 = vrot.slane %v2276_v12, 5  ;;  %v2301_v37 = vor.u32 %v2300_v3, %v2297_v8  ;;  %v3932_v16 = vld [vmem:[#allocation3 + $0x10] sm:$0xe]  ;;  %v3933_v42 = vld [vmem:[#allocation3 + $0x14] sm:$0x1] }
 0x198   : > { %4981 = vmatpush3.bf16.msra.mxu0 %v5380_v60  ;;  %v2293_v28 = vsel %vm5526_vm4, %v2288_v46, %v2292_v15  ;;  %v2946_v2 = vshrl.u32 %v2917_v23, 16  ;;  %v2932_v38 = vshrl.u32 %v2915_v22, 16  ;;  %v2935_v40 = vshll.u32 %v2915_v22, 16  ;;  %v6072_v52 = vld [vmem:[%s6322_s3 + $0x208] sm:$0xff]   ;;  %v3934_v17 = vld [vmem:[#allocation3 + $0x18] sm:$0xe] }
 0x199   : > { %4982 = vmatprep.subr.bf16.mxu0 %v5382_v49  ;;  %v2265_v34 = vsel %vm5526_vm4, %v2260_v9, %v2264_v24  ;;  %v2949_v44 = vshll.u32 %v2917_v23, 16  ;;  %v2279_v47 = vsel %vm5526_vm4, %v2274_v54, %v2278_v26  ;;  %v2304_v48 = vshll.u32 %v2207_v31, 16  ;;  %v3935_v29 = vld [vmem:[#allocation3 + $0x1c] sm:$0x1]  ;;  %v5386_v53 = vld [vmem:[%s6322_s3 + $0x100] sm:$0xff]   ;;  %v6082_v43 = vld [vmem:[%s6322_s3 + $0x210] sm:$0xff]  }
 0x19a   : > { %5025 = vmatpush3.bf16.msra.mxu1 %v5377_v58  ;;  %v4458_v45 = vcombine.low %v2251_v27, %v2265_v34  ;;  %v2315_v32 = vor.u32 %v2314_v11, %v2311_v19  ;;  %v4459_v51 = vcombine.low %v2279_v47, %v2293_v28  ;;  %v2948_v39 = vrot.slane %v2946_v2, 4  ;;  %v2918_v20 = vld [vmem:[#allocation3 + $0x14] sm:$0x1]  ;;  %v2916_v5 = vld [vmem:[#allocation3 + $0xc] sm:$0x1]  ;;  %v6100_v18 = vld [vmem:[%s6322_s3 + $0x218] sm:$0xff]  }
 0x19b   : > { %5026 = vmatprep.subr.bf16.mxu1 %v5379_v62  ;;  %v2951_v58 = vrot.slane %v2949_v44, 5  ;;  %v2302_v60 = vrot.slane %v2301_v37, 4  ;;  %v2318_v6 = vshll.u32 %v2209_v35, 16  ;;  %v4653_v25 = vrot.slane %v3932_v16, 9  ;;  %v5385_v36 = vld [vmem:[#allocation3 + $0x18] ss:$8 sps:$4 sm:$0xff]  }
 0x19c   : > { %4983 = vmatpush3.bf16.msra.mxu0 %v5382_v49  ;;  %v3966_v55 = vrot.slane %v3933_v42, 5  ;;  %v2934_v56 = vrot.slane %v2932_v38, 4  ;;  %v2937_v4 = vrot.slane %v2935_v40, 5  ;;  %v2306_v57 = vrot.slane %v2304_v48, 5  ;;  %v5389_v49 = vld [vmem:[%s6322_s3 + $0x108] sm:$0xff]   ;;  %v5392_v54 = vld [vmem:[%s6322_s3 + $0x110] sm:$0xff]  }
 0x19d   : > { %5136 = vmatprep.subr.bf16.mxu0 %v6055_v14  ;;  %v2316_v59 = vrot.slane %v2315_v32, 4  ;;  %v4654_v61 = vrot.slane %v3934_v17, 9  ;;  %v2952_v63 = vor.u32 %v2951_v58, %v2948_v39  ;;  %v2320_v1 = vrot.slane %v2318_v6, 5  ;;  %v5387_v10 = vld [vmem:[#allocation3 + $0x28] ss:$8 sps:$4 sm:$0xff]   ;;  %v6112_v23 = vld [vmem:[%s6322_s3 + $0x220] sm:$0xff]  }
 0x19e   : > { %5027 = vmatpush3.bf16.msra.mxu1 %v5379_v62  ;;  %v3970_v62 = vrot.slane %v3935_v29, 5  ;;  %v2307_v0 = vsel %vm5526_vm4, %v2302_v60, %v2306_v57  ;;  %v3967_v50 = vsel %vm5961_vm14, %v4653_v25, %v3966_v55  ;;  %v2938_v33 = vor.u32 %v2937_v4, %v2934_v56  ;;  %v5391_v27 = vld [vmem:[#allocation3 + $0x38] ss:$8 sps:$4 sm:$0xff]   ;;  %v6124_v28 = vld [vmem:[%s6322_s3 + $0x228] sm:$0xff]   ;;  %v6132_v34 = vld [vmem:[%s6322_s3 + $0x230] sm:$0xff]  }
 0x19f   : > { %5028 = vmatprep.subr.bf16.mxu1 %v5381_v13  ;;  %4985 = vmatmul.mubr.bf16.vlgmr.msra.gmra.mrb[8].mxu0 %v4458_v45  ;;  %v2955_v7 = vshll.u32 %v2918_v20, 16  ;;  %v2321_v12 = vsel %vm5526_vm4, %v2316_v59, %v2320_v1  ;;  %v2941_v3 = vshll.u32 %v2916_v5, 16  ;;  %v5394_v31 = vld [vmem:[%s6322_s3 + $0x118] sm:$0xff]   ;;  %v2921_v37 = vld [vmem:[#allocation3 + $0x20] sm:$0xf]  ;;  %v5398_v45 = vld [vmem:[%s6322_s3 + $0x128] sm:$0xff]  }
 0x1a0   : > { %4988 = vmatprep.mubr.bf16.mxu0 %v4459_v51  ;;  %5137 = vmatpush3.bf16.msra.mxu0 %v6055_v14  ;;  %v4460_v46 = vcombine.low %v2307_v0, %v2321_v12  ;;  %v3971_v8 = vsel %vm5961_vm14, %v4654_v61, %v3970_v62  ;;  %v2939_v15 = vrot.slane %v2938_v33, 4  ;;  %v5396_v2 = vld [vmem:[%s6322_s3 + $0x120] sm:$0xff]   ;;  %v2919_v35 = vld [vmem:[#allocation3 + $0x18] sm:$0xf]  ;;  %v2923_v38 = vld [vmem:[#allocation3 + $0x28] sm:$0xf] }
 0x1a1   : > { %5138 = vmatprep.subr.bf16.mxu0 %v6072_v52  ;;  %v4677_v9 = vcombine.low %v3967_v50, %v3971_v8  ;;  %v2957_v19 = vrot.slane %v2955_v7, 5  ;;  %v2943_v11 = vrot.slane %v2941_v3, 5  ;;  %v2974_v40 = vshrl.u32 %v2921_v37, 16  ;;  %v3936_v47 = vld [vmem:[#allocation3 + $0x20] sm:$0xe]  ;;  %v6142_v58 = vld [vmem:[%s6322_s3 + $0x238] sm:$0xff]  }
 0x1a2   : > { %5029 = vmatpush3.bf16.msra.mxu1 %v5381_v13  ;;  %v2953_v13 = vrot.slane %v2952_v63, 4  ;;  %v2977_v44 = vshll.u32 %v2921_v37, 16  ;;  %v3938_v48 = vld [vmem:[#allocation3 + $0x28] sm:$0xe]  ;;  %v3939_v32 = vld [vmem:[#allocation3 + $0x2c] sm:$0x1] }
 0x1a3   : > { %5030 = vmatprep.subr.bf16.mxu1 %v5383_v30  ;;  %v2944_v24 = vsel %vm5526_vm4, %v2939_v15, %v2943_v11  ;;  %v2960_v51 = vshrl.u32 %v2919_v35, 16  ;;  %v2963_v39 = vshll.u32 %v2919_v35, 16  ;;  %v3937_v60 = vld [vmem:[#allocation3 + $0x24] sm:$0x1]  ;;  %v2988_v6 = vshrl.u32 %v2923_v38, 16  ;;  %v5400_v59 = vld [vmem:[%s6322_s3 + $0x130] sm:$0xff]  }
 0x1a4   : > { %5139 = vmatpush3.bf16.msra.mxu0 %v6072_v52  ;;  %v2958_v22 = vsel %vm5526_vm4, %v2953_v13, %v2957_v19  ;;  %v2991_v17 = vshll.u32 %v2923_v38, 16  ;;  %v4656_v29 = vrot.slane %v3938_v48, 9  ;;  %v2976_v25 = vrot.slane %v2974_v40, 4  ;;  %v2929_v57 = vld [vmem:[#allocation3 + $0x40] sm:$0xf]  ;;  %v5402_v15 = vld [vmem:[%s6322_s3 + $0x138] sm:$0xff]  }
 0x1a5   : > { %5140 = vmatprep.subr.bf16.mxu0 %v6082_v43  ;;  %v4549_v26 = vcombine.low %v2944_v24, %v2958_v22  ;;  %v2979_v55 = vrot.slane %v2977_v44, 5  ;;  %v4655_v20 = vrot.slane %v3936_v47, 9  ;;  %v2920_v61 = vld [vmem:[#allocation3 + $0x1c] sm:$0x1]  ;;  %v2962_v62 = vrot.slane %v2960_v51, 4 }
 0x1a6   : > { %5031 = vmatpush3.bf16.msra.mxu1 %v5383_v30  ;;  %v2925_v30 = vld [vmem:[#allocation3 + $0x30] sm:$0xf]  ;;  %v2965_v63 = vrot.slane %v2963_v39, 5  ;;  %v2922_v0 = vld [vmem:[#allocation3 + $0x24] sm:$0x1]  ;;  %v2990_v1 = vrot.slane %v2988_v6, 4 }
 0x1a7   : > { %5040 = vmatprep.subr.bf16.mxu1 %v5386_v53  ;;  %4989 = vmatmul.mubr.bf16.gmra.mrb[12].mxu0 %v4460_v46  ;;  %v3002_v16 = vshrl.u32 %v2925_v30, 16  ;;  %v3005_v42 = vshll.u32 %v2925_v30, 16  ;;  %v2993_v5 = vrot.slane %v2991_v17, 5  ;;  %v2980_v50 = vor.u32 %v2979_v55, %v2976_v25  ;;  %v2926_v33 = vld [vmem:[#allocation3 + $0x34] sm:$0x1] }
 0x1a8   : > { %5141 = vmatpush3.bf16.msra.mxu0 %v6082_v43  ;;  %5152 = vmatprep.mubr.bf16.mxu0 %v4677_v9  ;;  %v3030_v7 = vshrl.u32 %v2929_v57, 16  ;;  %v2966_v8 = vor.u32 %v2965_v63, %v2962_v62  ;;  %v2983_v3 = vshll.u32 %v2922_v0, 16  ;;  %v2924_v13 = vld [vmem:[#allocation3 + $0x2c] sm:$0x1]  ;;  %v2969_v19 = vshll.u32 %v2920_v61, 16 }
 0x1a9   : > { %5033 = vmatmul.mubr.bf16.vlgmr.msra.gmra.mrb[0].mxu1 %v5385_v36  ;;  %5142 = vmatprep.subr.bf16.mxu0 %v6100_v18  ;;  %v3004_v56 = vrot.slane %v3002_v16, 4  ;;  %v3007_v4 = vrot.slane %v3005_v42, 5  ;;  %v2927_v36 = vld [vmem:[#allocation3 + $0x38] sm:$0xf]  ;;  %v2994_v11 = vor.u32 %v2993_v5, %v2990_v1  ;;  %v3011_v22 = vshll.u32 %v2926_v33, 16 }
 0x1aa   : > { %5036 = vmatprep.mubr.bf16.mxu1 %v5387_v10  ;;  %5041 = vmatpush3.bf16.msra.mxu1 %v5386_v53  ;;  %v3978_v53 = vrot.slane %v3939_v32, 5  ;;  %v3033_v10 = vshll.u32 %v2929_v57, 16  ;;  %v3016_v9 = vshrl.u32 %v2927_v36, 16  ;;  %v2981_v24 = vrot.slane %v2980_v50, 4  ;;  %v2930_v32 = vld [vmem:[#allocation3 + $0x44] sm:$0x1] }
 0x1ab   : > { %5042 = vmatprep.subr.bf16.mxu1 %v5389_v49  ;;  %v3008_v46 = vor.u32 %v3007_v4, %v3004_v56  ;;  %v2967_v35 = vrot.slane %v2966_v8, 4  ;;  %v2985_v38 = vrot.slane %v2983_v3, 5  ;;  %v2995_v47 = vrot.slane %v2994_v11, 4  ;;  %v2928_v6 = vld [vmem:[#allocation3 + $0x3c] sm:$0x1]  ;;  %v5404_v57 = vld [vmem:[%s6322_s3 + $0x148] sm:$0xff]  }
 0x1ac   : > { %5143 = vmatpush3.bf16.msra.mxu0 %v6100_v18  ;;  %v3979_v12 = vsel %vm5961_vm14, %v4656_v29, %v3978_v53  ;;  %v3018_v40 = vrot.slane %v3016_v9, 4  ;;  %v3013_v48 = vrot.slane %v3011_v22, 5  ;;  %v2971_v16 = vrot.slane %v2969_v19, 5  ;;  %v3215_v25 = vld [vmem:[#allocation3 + $0x10] sm:$0xe] }
 0x1ad   : > { %5144 = vmatprep.subr.bf16.mxu0 %v6112_v23  ;;  %v3009_v30 = vrot.slane %v3008_v46, 4  ;;  %v2986_v42 = vsel %vm5526_vm4, %v2981_v24, %v2985_v38  ;;  %v3039_v53 = vshll.u32 %v2930_v32, 16  ;;  %v3216_v55 = vld [vmem:[#allocation3 + $0x14] sm:$0x1]  ;;  %v3213_v62 = vld [vmem:[#allocation3 + $0x8] sm:$0xe] }
 0x1ae   : > { %5043 = vmatpush3.bf16.msra.mxu1 %v5389_v49  ;;  %v3974_v49 = vrot.slane %v3937_v60, 5  ;;  %v2972_v17 = vsel %vm5526_vm4, %v2967_v35, %v2971_v16  ;;  %v3214_v63 = vld [vmem:[#allocation3 + $0xc] sm:$0x1]  ;;  %v4562_v0 = vrot.slane %v3215_v25, 9  ;;  %v3251_v1 = vrot.slane %v3216_v55, 5  ;;  %v5409_v19 = vld [vmem:[%s6322_s3 + $0x170] sm:$0xff]  }
 0x1af   : > { %5044 = vmatprep.subr.bf16.mxu1 %v5392_v54  ;;  %v3014_v60 = vsel %vm5526_vm4, %v3009_v30, %v3013_v48  ;;  %v4550_v56 = vcombine.low %v2972_v17, %v2986_v42  ;;  %v4561_v50 = vrot.slane %v3213_v62, 9  ;;  %v3247_v33 = vrot.slane %v3214_v63, 5  ;;  %v3219_v11 = vld [vmem:[#allocation3 + $0x20] sm:$0xe]  ;;  %v3220_v22 = vld [vmem:[#allocation3 + $0x24] sm:$0x1] }
 0x1b0   : > { %5145 = vmatpush3.bf16.msra.mxu0 %v6112_v23  ;;  %v3224_v24 = vld [vmem:[#allocation3 + $0x34] sm:$0x1]  ;;  %v3259_v30 = vrot.slane %v3220_v22, 5  ;;  %v3221_v35 = vld [vmem:[#allocation3 + $0x28] sm:$0xe]  ;;  %v5411_v48 = vld [vmem:[%s6322_s3 + $0x180] sm:$0xff]  }
 0x1b1   : > { %5037 = vmatmul.mubr.bf16.gmra.mrb[4].mxu1 %v5391_v27  ;;  %5146 = vmatprep.subr.bf16.mxu0 %v6124_v28  ;;  %v3975_v27 = vsel %vm5961_vm14, %v4655_v20, %v3974_v49  ;;  %v3025_v20 = vshll.u32 %v2928_v6, 16  ;;  %v5405_v49 = vld [vmem:[%s6322_s3 + $0x150] sm:$0xff]   ;;  %v3248_v3 = vsel %vm5961_vm14, %v4561_v50, %v3247_v33  ;;  %v3222_v38 = vld [vmem:[#allocation3 + $0x2c] sm:$0x1]  ;;  %v4565_v32 = vrot.slane %v3221_v35, 9 }
 0x1b2   : > { %5045 = vmatpush3.bf16.msra.mxu1 %v5392_v54  ;;  %5056 = vmatprep.mubr.bf16.mxu1 %v4549_v26  ;;  %v3019_v54 = vshll.u32 %v2927_v36, 16  ;;  %v3035_v26 = vrot.slane %v3033_v10, 5  ;;  %v4678_v37 = vcombine.low %v3975_v27, %v3979_v12  ;;  %v3041_v36 = vrot.slane %v3039_v53, 5  ;;  %v3223_v27 = vld [vmem:[#allocation3 + $0x30] sm:$0xe]  ;;  %v5412_v53 = vld [vmem:[%s6322_s3 + $0x188] sm:$0xff]  }
 0x1b3   : > { %5046 = vmatprep.subr.bf16.mxu1 %v5394_v31  ;;  %v3252_v12 = vsel %vm5961_vm14, %v4562_v0, %v3251_v1  ;;  %v3263_v16 = vrot.slane %v3222_v38, 5  ;;  %v3225_v25 = vld [vmem:[#allocation3 + $0x38] sm:$0xe]  ;;  %v3226_v55 = vld [vmem:[#allocation3 + $0x3c] sm:$0x1]  ;;  %v5418_v33 = vld [vmem:[%s6322_s3 + $0x1b0] sm:$0xff]  }
 0x1b4   : > { %5147 = vmatpush3.bf16.msra.mxu0 %v6124_v28  ;;  %v3021_v44 = vrot.slane %v3019_v54, 5  ;;  %v4585_v9 = vcombine.low %v3248_v3, %v3252_v12  ;;  %v5407_v54 = vld [vmem:[%s6322_s3 + $0x160] sm:$0xff]   ;;  %v5415_v1 = vld [vmem:[%s6322_s3 + $0x198] sm:$0xff]   ;;  %v3634_v50 = vld [vmem:[#allocation3 + $0x10] sm:$0xf] }
 0x1b5   : > { %5148 = vmatprep.subr.bf16.mxu0 %v6132_v34  ;;  %v3654_v12 = vshll.u32 %v3634_v50, 16  ;;  %v5425_v38 = vld [vmem:[%s6322_s3 + $0x1d0] sm:$0xff]  }
 0x1b6   : > { %5047 = vmatpush3.bf16.msra.mxu1 %v5394_v31  ;;  %v3032_v31 = vrot.slane %v3030_v7, 4  ;;  %v3022_v29 = vor.u32 %v3021_v44, %v3018_v40  ;;  %v3027_v7 = vrot.slane %v3025_v20, 5  ;;  %v4566_v40 = vrot.slane %v3223_v27, 9  ;;  %v3637_v27 = vld [vmem:[#allocation3 + $0x1c] sm:$0x1] }
 0x1b7   : > { %5048 = vmatprep.subr.bf16.mxu1 %v5396_v2  ;;  %v3267_v44 = vrot.slane %v3224_v24, 5  ;;  %v3271_v20 = vrot.slane %v3226_v55, 5  ;;  %v5420_v24 = vld [vmem:[#allocation3 + $0x20] ss:$8 sps:$4 sm:$0xff]   ;;  %v3674_v35 = vshll.u32 %v3637_v27, 16  ;;  %v5430_v27 = vld [vmem:[%s6322_s3 + $0x1f8] sm:$0xff]  }
 0x1b8   : > { %5149 = vmatpush3.bf16.msra.mxu0 %v6132_v34  ;;  %v3036_v51 = vor.u32 %v3035_v26, %v3032_v31  ;;  %v3023_v5 = vrot.slane %v3022_v29, 4  ;;  %v5410_v31 = vld [vmem:[%s6322_s3 + $0x178] sm:$0xff]   ;;  %v3264_v29 = vsel %vm5961_vm14, %v4565_v32, %v3263_v16 }
 0x1b9   : > { %5150 = vmatprep.subr.bf16.mxu0 %v6142_v58  ;;  %v3217_v26 = vld [vmem:[#allocation3 + $0x18] sm:$0xe] }
 0x1ba   : > { %5049 = vmatpush3.bf16.msra.mxu1 %v5396_v2  ;;  %v2997_v2 = vshll.u32 %v2924_v13, 16  ;;  %v3037_v61 = vrot.slane %v3036_v51, 4  ;;  %v3028_v46 = vsel %vm5526_vm4, %v3023_v5, %v3027_v7  ;;  %v5406_v13 = vld [vmem:[%s6322_s3 + $0x158] sm:$0xff]   ;;  %v3268_v51 = vsel %vm5961_vm14, %v4566_v40, %v3267_v44 }
 0x1bb   : > { %5050 = vmatprep.subr.bf16.mxu1 %v5398_v45  ;;  %v5414_v5 = vld [vmem:[#allocation3 + $0x10] ss:$8 sps:$4 sm:$0xff]  }
 0x1bc   : > { %5151 = vmatpush3.bf16.msra.mxu0 %v6142_v58  ;;  %v2999_v39 = vrot.slane %v2997_v2, 5  ;;  %v3042_v10 = vsel %vm5526_vm4, %v3037_v61, %v3041_v36  ;;  %v4564_v2 = vrot.slane %v3219_v11, 9  ;;  %v5413_v61 = vld [vmem:[%s6322_s3 + $0x190] sm:$0xff]   ;;  %v5416_v36 = vld [vmem:[%s6322_s3 + $0x1a0] sm:$0xff]   ;;  %v3636_v7 = vld [vmem:[#allocation3 + $0x18] sm:$0xf] }
 0x1bd   : > { %v4552_v8 = vcombine.low %v3028_v46, %v3042_v10  ;;  %v3651_v10 = vshrl.u32 %v3634_v50, 16  ;;  %v5419_v46 = vld [vmem:[%s6322_s3 + $0x1b8] sm:$0xff]   ;;  %v3668_v3 = vshll.u32 %v3636_v7, 16  ;;  %v3635_v11 = vld [vmem:[#allocation3 + $0x14] sm:$0x1] }
 0x1be   : > { %5051 = vmatpush3.bf16.msra.mxu1 %v5398_v45  ;;  %v5403_v45 = vld [vmem:[%s6322_s3 + $0x140] sm:$0xff]   ;;  %v3000_v4 = vsel %vm5526_vm4, %v2995_v47, %v2999_v39  ;;  %v3260_v42 = vsel %vm5961_vm14, %v4564_v2, %v3259_v30  ;;  %v5422_v2 = vld [vmem:[#allocation3 + $0x30] ss:$8 sps:$4 sm:$0xff]  }
 0x1bf   : > { %5052 = vmatprep.subr.bf16.mxu1 %v5400_v59  ;;  %5153 = vmatmul.mubr.bf16.vlgmr.msra.gmra.mrb[16].mxu0 %v4678_v37  ;;  %v3218_v37 = vld [vmem:[#allocation3 + $0x1c] sm:$0x1]  ;;  %v3227_v39 = vld [vmem:[#allocation3 + $0x40] sm:$0xe] }
 0x1c0   : > { %v3255_v47 = vrot.slane %v3218_v37, 5  ;;  %v5426_v16 = vld [vmem:[%s6322_s3 + $0x1d8] sm:$0xff]  }
 0x1c2   : > { %5053 = vmatpush3.bf16.msra.mxu1 %v5400_v59  ;;  %v4551_v59 = vcombine.low %v3000_v4, %v3014_v60  ;;  %v3228_v60 = vld [vmem:[#allocation3 + $0x44] sm:$0x1]  ;;  %v4568_v4 = vrot.slane %v3227_v39, 9  ;;  %v3642_v39 = vld [vmem:[#allocation3 + $0x30] sm:$0xf] }
 0x1c3   : > { %5054 = vmatprep.subr.bf16.mxu1 %v5402_v15  ;;  %v3710_v55 = vshll.u32 %v3642_v39, 16 }
 0x1c6   : > { %5055 = vmatpush3.bf16.msra.mxu1 %v5402_v15  ;;  %v5408_v15 = vld [vmem:[%s6322_s3 + $0x168] sm:$0xff]  }
 0x1c7   : > { %5064 = vmatprep.subr.bf16.mxu1 %v5403_v45 }
 0x1c9   : > { %5057 = vmatmul.mubr.bf16.vlgmr.msra.gmra.mrb[0].mxu1 %v4550_v56  ;;  %v4587_v56 = vcombine.low %v3264_v29, %v3268_v51  ;;  %v3640_v51 = vld [vmem:[#allocation3 + $0x28] sm:$0xf] }
 0x1ca   : > { %5060 = vmatprep.mubr.bf16.mxu1 %v4551_v59  ;;  %5065 = vmatpush3.bf16.msra.mxu1 %v5403_v45  ;;  %v4563_v45 = vrot.slane %v3217_v26, 9  ;;  %v4567_v59 = vrot.slane %v3225_v25, 9  ;;  %v3660_v26 = vshll.u32 %v3635_v11, 16  ;;  %v3696_v29 = vshll.u32 %v3640_v51, 16 }
 0x1cb   : > { %5066 = vmatprep.subr.bf16.mxu1 %v5404_v57  ;;  %v3707_v25 = vshrl.u32 %v3642_v39, 16 }
 0x1cc   : > { %v3256_v6 = vsel %vm5961_vm14, %v4563_v45, %v3255_v47  ;;  %v3272_v63 = vsel %vm5961_vm14, %v4567_v59, %v3271_v20  ;;  %v3662_v40 = vrot.slane %v3660_v26, 5  ;;  %v3676_v47 = vrot.slane %v3674_v35, 5 }
 0x1cd   : > { %v4586_v17 = vcombine.low %v3256_v6, %v3260_v42  ;;  %v3638_v6 = vld [vmem:[#allocation3 + $0x20] sm:$0xf] }
 0x1ce   : > { %5067 = vmatpush3.bf16.msra.mxu1 %v5404_v57  ;;  %v3275_v57 = vrot.slane %v3228_v60, 5  ;;  %v5427_v60 = vld [vmem:[%s6322_s3 + $0x1e0] sm:$0xff]  }
 0x1cf   : > { %5068 = vmatprep.subr.bf16.mxu1 %v5405_v49 }
 0x1d0   : > { %v3276_v62 = vsel %vm5961_vm14, %v4568_v4, %v3275_v57  ;;  %v3682_v4 = vshll.u32 %v3638_v6, 16  ;;  %v5428_v57 = vld [vmem:[%s6322_s3 + $0x1e8] sm:$0xff]  }
 0x1d1   : > { %5061 = vmatmul.mubr.bf16.gmra.mrb[4].mxu1 %v4552_v8  ;;  %v4588_v0 = vcombine.low %v3272_v63, %v3276_v62  ;;  %v3665_v8 = vshrl.u32 %v3636_v7, 16  ;;  %v3698_v63 = vrot.slane %v3696_v29, 5  ;;  %v3641_v7 = vld [vmem:[#allocation3 + $0x2c] sm:$0x1] }
 0x1d2   : > { %5069 = vmatpush3.bf16.msra.mxu1 %v5405_v49  ;;  %5080 = vmatprep.mubr.bf16.mxu1 %v4585_v9  ;;  %v5417_v49 = vld [vmem:[%s6322_s3 + $0x1a8] sm:$0xff]   ;;  %v3656_v9 = vrot.slane %v3654_v12, 5  ;;  %v3702_v11 = vshll.u32 %v3641_v7, 16 }
 0x1d3   : > { %5070 = vmatprep.subr.bf16.mxu1 %v5406_v13 }
 0x1d6   : > { %5071 = vmatpush3.bf16.msra.mxu1 %v5406_v13  ;;  %v3653_v13 = vrot.slane %v3651_v10, 4 }
 0x1d7   : > { %5072 = vmatprep.subr.bf16.mxu1 %v5407_v54 }
 0x1d8   : > { %v3657_v22 = vor.u32 %v3656_v9, %v3653_v13 }
 0x1da   : > { %5073 = vmatpush3.bf16.msra.mxu1 %v5407_v54  ;;  %v5421_v54 = vld [vmem:[%s6322_s3 + $0x1c0] sm:$0xff]   ;;  %v3658_v30 = vrot.slane %v3657_v22, 4  ;;  %v3645_v22 = vld [vmem:[#allocation3 + $0x3c] sm:$0x1] }
 0x1db   : > { %5074 = vmatprep.subr.bf16.mxu1 %v5408_v15 }
 0x1dc   : > { %v3663_v45 = vsel %vm5526_vm4, %v3658_v30, %v3662_v40 }
 0x1de   : > { %5075 = vmatpush3.bf16.msra.mxu1 %v5408_v15  ;;  %v3667_v15 = vrot.slane %v3665_v8, 4 }
 0x1df   : > { %5076 = vmatprep.subr.bf16.mxu1 %v5409_v19 }
 0x1e2   : > { %5077 = vmatpush3.bf16.msra.mxu1 %v5409_v19  ;;  %v3670_v19 = vrot.slane %v3668_v3, 5  ;;  %v3643_v3 = vld [vmem:[#allocation3 + $0x34] sm:$0x1] }
 0x1e3   : > { %5078 = vmatprep.subr.bf16.mxu1 %v5410_v31 }
 0x1e4   : > { %v3671_v37 = vor.u32 %v3670_v19, %v3667_v15 }
 0x1e6   : > { %5079 = vmatpush3.bf16.msra.mxu1 %v5410_v31  ;;  %v5423_v31 = vld [vmem:[%s6322_s3 + $0x1c8] sm:$0xff]   ;;  %v3672_v44 = vrot.slane %v3671_v37, 4 }
 0x1e7   : > { %5088 = vmatprep.subr.bf16.mxu1 %v5411_v48 }
 0x1e8   : > { %v3677_v32 = vsel %vm5526_vm4, %v3672_v44, %v3676_v47  ;;  %v3730_v44 = vshll.u32 %v3645_v22, 16 }
 0x1e9   : > { %5081 = vmatmul.mubr.bf16.vlgmr.msra.gmra.mrb[0].mxu1 %v4586_v17  ;;  %v4641_v42 = vcombine.low %v3663_v45, %v3677_v32  ;;  %v3693_v17 = vshrl.u32 %v3640_v51, 16  ;;  %v3649_v45 = vld [vmem:[#allocation3 + $0x4c] sm:$0x1] }
 0x1ea   : > { %5084 = vmatprep.mubr.bf16.mxu1 %v4587_v56  ;;  %5089 = vmatpush3.bf16.msra.mxu1 %v5411_v48  ;;  %v5424_v48 = vld [vmem:[#allocation3 + $0x40] ss:$8 sps:$4 sm:$0xff]   ;;  %v3679_v56 = vshrl.u32 %v3638_v6, 16 }
 0x1eb   : > { %5090 = vmatprep.subr.bf16.mxu1 %v5412_v53  ;;  %v3695_v62 = vrot.slane %v3693_v17, 4  ;;  %v3758_v17 = vshll.u32 %v3649_v45, 16 }
 0x1ed   : > { %v3699_v8 = vor.u32 %v3698_v63, %v3695_v62  ;;  %v3760_v63 = vrot.slane %v3758_v17, 5 }
 0x1ee   : > { %5091 = vmatpush3.bf16.msra.mxu1 %v5412_v53  ;;  %v3644_v53 = vld [vmem:[#allocation3 + $0x38] sm:$0xf] }
 0x1ef   : > { %5092 = vmatprep.subr.bf16.mxu1 %v5413_v61  ;;  %v3721_v59 = vshrl.u32 %v3644_v53, 16  ;;  %v3724_v20 = vshll.u32 %v3644_v53, 16  ;;  %v3700_v30 = vrot.slane %v3699_v8, 4  ;;  %v3732_v53 = vrot.slane %v3730_v44, 5 }
 0x1f1   : > { %5085 = vmatmul.mubr.bf16.gmra.mrb[4].mxu1 %v4588_v0  ;;  %v3709_v0 = vrot.slane %v3707_v25, 4  ;;  %v3723_v10 = vrot.slane %v3721_v59, 4  ;;  %v3726_v12 = vrot.slane %v3724_v20, 5 }
 0x1f2   : > { %5093 = vmatpush3.bf16.msra.mxu1 %v5413_v61  ;;  %5104 = vmatprep.mubr.bf16.mxu1 %v5414_v5  ;;  %v3648_v61 = vld [vmem:[#allocation3 + $0x48] sm:$0xf]  ;;  %v3646_v5 = vld [vmem:[#allocation3 + $0x40] sm:$0xf] }
 0x1f3   : > { %5094 = vmatprep.subr.bf16.mxu1 %v5415_v1  ;;  %v3749_v50 = vshrl.u32 %v3648_v61, 16  ;;  %v3735_v13 = vshrl.u32 %v3646_v5, 16  ;;  %v3738_v9 = vshll.u32 %v3646_v5, 16 }
 0x1f5   : > { %v3751_v26 = vrot.slane %v3749_v50, 4  ;;  %v3737_v35 = vrot.slane %v3735_v13, 4  ;;  %v3947_v13 = vld [vmem:[#allocation3 + $0x4c] sm:$0x1] }
 0x1f6   : > { %5095 = vmatpush3.bf16.msra.mxu1 %v5415_v1  ;;  %v3712_v1 = vrot.slane %v3710_v55, 5 }
 0x1f7   : > { %5096 = vmatprep.subr.bf16.mxu1 %v5416_v36 }
 0x1f8   : > { %v3713_v15 = vor.u32 %v3712_v1, %v3709_v0  ;;  %v3942_v0 = vld [vmem:[#allocation3 + $0x38] sm:$0xe]  ;;  %v3943_v1 = vld [vmem:[#allocation3 + $0x3c] sm:$0x1] }
 0x1f9   : > { %v4658_v50 = vrot.slane %v3942_v0, 9 }
 0x1fa   : > { %5097 = vmatpush3.bf16.msra.mxu1 %v5416_v36  ;;  %v3681_v36 = vrot.slane %v3679_v56, 4  ;;  %v3714_v40 = vrot.slane %v3713_v15, 4  ;;  %v3940_v56 = vld [vmem:[#allocation3 + $0x30] sm:$0xe]  ;;  %v3994_v15 = vrot.slane %v3947_v13, 5 }
 0x1fb   : > { %5098 = vmatprep.subr.bf16.mxu1 %v5417_v49  ;;  %v4657_v5 = vrot.slane %v3940_v56, 9 }
 0x1fe   : > { %5099 = vmatpush3.bf16.msra.mxu1 %v5417_v49  ;;  %v3684_v49 = vrot.slane %v3682_v4, 5  ;;  %v3941_v4 = vld [vmem:[#allocation3 + $0x34] sm:$0x1] }
 0x1ff   : > { %5100 = vmatprep.subr.bf16.mxu1 %v5418_v33 }
 0x200   : > { %v3685_v19 = vor.u32 %v3684_v49, %v3681_v36  ;;  %v3982_v36 = vrot.slane %v3941_v4, 5 }
 0x202   : > { %5101 = vmatpush3.bf16.msra.mxu1 %v5418_v33  ;;  %v5429_v33 = vld [vmem:[%s6322_s3 + $0x1f0] sm:$0xff]   ;;  %v3686_v47 = vrot.slane %v3685_v19, 4 }
 0x203   : > { %5102 = vmatprep.subr.bf16.mxu1 %v5419_v46 }
 0x206   : > { %5103 = vmatpush3.bf16.msra.mxu1 %v5419_v46  ;;  %v3752_v46 = vshll.u32 %v3648_v61, 16 }
 0x207   : > { %5112 = vmatprep.subr.bf16.mxu1 %v5421_v54 }
 0x208   : > { %v3754_v37 = vrot.slane %v3752_v46, 5 }
 0x209   : > { %5105 = vmatmul.mubr.bf16.vlgmr.msra.gmra.mrb[0].mxu1 %v5420_v24  ;;  %v3716_v24 = vshll.u32 %v3643_v3, 16  ;;  %v3945_v3 = vld [vmem:[#allocation3 + $0x44] sm:$0x1] }
 0x20a   : > { %5108 = vmatprep.mubr.bf16.mxu1 %v5422_v2  ;;  %5113 = vmatpush3.bf16.msra.mxu1 %v5421_v54  ;;  %v3639_v54 = vld [vmem:[#allocation3 + $0x24] sm:$0x1]  ;;  %v3755_v51 = vor.u32 %v3754_v37, %v3751_v26 }
 0x20b   : > { %5114 = vmatprep.subr.bf16.mxu1 %v5423_v31  ;;  %v3688_v2 = vshll.u32 %v3639_v54, 16  ;;  %v3718_v32 = vrot.slane %v3716_v24, 5  ;;  %v4660_v54 = vrot.slane %v3946_v41, 9 }
 0x20c   : > { %v3756_v20 = vrot.slane %v3755_v51, 4 }
 0x20d   : > { %v3690_v39 = vrot.slane %v3688_v2, 5  ;;  %v3719_v29 = vsel %vm5526_vm4, %v3714_v40, %v3718_v32 }
 0x20e   : > { %5115 = vmatpush3.bf16.msra.mxu1 %v5423_v31  ;;  %v3727_v31 = vor.u32 %v3726_v12, %v3723_v10  ;;  %v3761_v10 = vsel %vm5526_vm4, %v3756_v20, %v3760_v63  ;;  %v3983_v12 = vsel %vm5961_vm14, %v4657_v5, %v3982_v36 }
 0x20f   : > { %5116 = vmatprep.subr.bf16.mxu1 %v5425_v38  ;;  %v3691_v25 = vsel %vm5526_vm4, %v3686_v47, %v3690_v39 }
 0x211   : > { %5109 = vmatmul.mubr.bf16.gmra.mrb[4].mxu1 %v5424_v48  ;;  %v3704_v48 = vrot.slane %v3702_v11, 5 }
 0x212   : > { %5117 = vmatpush3.bf16.msra.mxu1 %v5425_v38  ;;  %5128 = vmatprep.mubr.bf16.mxu1 %v4641_v42  ;;  %v3740_v38 = vrot.slane %v3738_v9, 5  ;;  %v3647_v42 = vld [vmem:[#allocation3 + $0x44] sm:$0x1]  ;;  %v3990_v9 = vrot.slane %v3945_v3, 5 }
 0x213   : > { %5118 = vmatprep.subr.bf16.mxu1 %v5426_v16  ;;  %v3744_v55 = vshll.u32 %v3647_v42, 16 }
 0x214   : > { %v3741_v6 = vor.u32 %v3740_v38, %v3737_v35 }
 0x215   : > { %v3746_v49 = vrot.slane %v3744_v55, 5 }
 0x216   : > { %5119 = vmatpush3.bf16.msra.mxu1 %v5426_v16  ;;  %v3728_v16 = vrot.slane %v3727_v31, 4  ;;  %v3742_v62 = vrot.slane %v3741_v6, 4 }
 0x217   : > { %5120 = vmatprep.subr.bf16.mxu1 %v5427_v60 }
 0x218   : > { %v3733_v59 = vsel %vm5526_vm4, %v3728_v16, %v3732_v53  ;;  %v3747_v7 = vsel %vm5526_vm4, %v3742_v62, %v3746_v49 }
 0x219   : > { %v4643_v61 = vcombine.low %v3719_v29, %v3733_v59  ;;  %v4644_v46 = vcombine.low %v3747_v7, %v3761_v10 }
 0x21a   : > { %5121 = vmatpush3.bf16.msra.mxu1 %v5427_v60  ;;  %v3705_v60 = vsel %vm5526_vm4, %v3700_v30, %v3704_v48 }
 0x21b   : > { %5122 = vmatprep.subr.bf16.mxu1 %v5428_v57 }
 0x21e   : > { %5123 = vmatpush3.bf16.msra.mxu1 %v5428_v57  ;;  %v4642_v57 = vcombine.low %v3691_v25, %v3705_v60 }
 0x21f   : > { %5124 = vmatprep.subr.bf16.mxu1 %v5429_v33 }
 0x222   : > { %5125 = vmatpush3.bf16.msra.mxu1 %v5429_v33  ;;  %v3986_v33 = vrot.slane %v3943_v1, 5 }
 0x223   : > { %5126 = vmatprep.subr.bf16.mxu1 %v5430_v27 }
 0x226   : > { %5127 = vmatpush3.bf16.msra.mxu1 %v5430_v27 }
 0x227   : > { %5160 = vmatprep.subr.bf16.mxu1 %v6055_v14 }
 0x229   : > { %5129 = vmatmul.mubr.bf16.vlgmr.msra.gmra.mrb[0].mxu1 %v4642_v57 }
 0x22a   : > { %5132 = vmatprep.mubr.bf16.mxu1 %v4643_v61  ;;  %5168 = vmatpush3.bf16.msra.mxu1 %v6055_v14  ;;  %v3987_v14 = vsel %vm5961_vm14, %v4658_v50, %v3986_v33 }
 0x22b   : > { %5161 = vmatprep.subr.bf16.mxu1 %v6072_v52  ;;  %v4679_v8 = vcombine.low %v3983_v12, %v3987_v14 }
 0x22e   : > { %5169 = vmatpush3.bf16.msra.mxu1 %v6072_v52  ;;  %v3944_v52 = vld [vmem:[#allocation3 + $0x40] sm:$0xe] }
 0x22f   : > { %5162 = vmatprep.subr.bf16.mxu1 %v6082_v43 }
 0x231   : > { %5133 = vmatmul.mubr.bf16.gmra.mrb[4].mxu1 %v4644_v46 }
 0x232   : > { %5170 = vmatpush3.bf16.msra.mxu1 %v6082_v43  ;;  %5156 = vmatprep.mubr.bf16.mxu1 %v4679_v8  ;;  %v4659_v43 = vrot.slane %v3944_v52, 9 }
 0x233   : > { %5163 = vmatprep.subr.bf16.mxu1 %v6100_v18 }
 0x236   : > { %5171 = vmatpush3.bf16.msra.mxu1 %v6100_v18  ;;  %v3991_v18 = vsel %vm5961_vm14, %v4659_v43, %v3990_v9 }
 0x237   : > { %5164 = vmatprep.subr.bf16.mxu1 %v6112_v23 }
 0x23a   : > { %5172 = vmatpush3.bf16.msra.mxu1 %v6112_v23  ;;  %v3995_v23 = vsel %vm5961_vm14, %v4660_v54, %v3994_v15 }
 0x23b   : > { %5165 = vmatprep.subr.bf16.mxu1 %v6124_v28  ;;  %v4680_v19 = vcombine.low %v3991_v18, %v3995_v23 }
 0x23e   : > { %5173 = vmatpush3.bf16.msra.mxu1 %v6124_v28 }
 0x23f   : > { %5166 = vmatprep.subr.bf16.mxu1 %v6132_v34 }
 0x242   : > { %5174 = vmatpush3.bf16.msra.mxu1 %v6132_v34 }
 0x243   : > { %5167 = vmatprep.subr.bf16.mxu1 %v6142_v58 }
 0x246   : > { %5175 = vmatpush3.bf16.msra.mxu1 %v6142_v58  ;;  %v4689_v58 = vld [vmem:[%s6323_s4] ss:$0 sm:$0xff] }
 0x249   : > { %5157 = vmatmul.mubr.bf16.vlgmr.msra.gmra.mrb[4].mxu1 %v4680_v19 }
 0x272   : > { %v4986_v28 = vpop.f32.mrb[8].mxu0 }
 0x273   : > { %v2437_v11 = vpop.f32.mrb[9].mxu0 }
 0x274   : > { %v4987_v22 = vpop.f32.mrb[10].mxu0 }
 0x275   : > { %v2440_v27 = vpop.f32.mrb[11].mxu0 }
 0x27a   : > { %v4990_v24 = vpop.f32.mrb[12].mxu0 }
 0x27b   : > { %v2453_v31 = vpop.f32.mrb[13].mxu0 }
 0x27c   : > { %v4991_v34 = vpop.f32.mrb[14].mxu0 }
 0x27d   : > { %v2456_v26 = vpop.f32.mrb[15].mxu0 }
 0x292   : > { %v5154_v37 = vpop.f32.mrb[16].mxu0 }
 0x293   : > { %v4111_v2 = vpop.f32.mrb[17].mxu0 }
 0x294   : > { %v5155_v30 = vpop.f32.mrb[18].mxu0 }
 0x295   : > { %v4114_v35 = vpop.f32.mrb[19].mxu0 }
 0x2fc   : > { %v5130_v38 = vpop.f32.mrb[0].mxu1 }
 0x2fd   : > { %v5176_v21 = vadd.f32 %v5130_v38, %v4986_v28  ;;  %v3877_v40 = vpop.f32.mrb[1].mxu1 }
 0x2fe   : > { %v5178_v44 = vadd.f32 %v3877_v40, %v2437_v11  ;;  %v5131_v45 = vpop.f32.mrb[2].mxu1 }
 0x2ff   : > { %v5177_v47 = vadd.f32 %v5176_v21, %v5154_v37  ;;  %v5180_v48 = vadd.f32 %v5131_v45, %v4987_v22  ;;  %v3880_v32 = vpop.f32.mrb[3].mxu1 }
 0x300   : > { %v5179_v16 = vadd.f32 %v5178_v44, %v4111_v2  ;;  %v5182_v42 = vadd.f32 %v3880_v32, %v2440_v27 }
 0x301   : > { %v4183_v51 = vadd.f32 %v5177_v47, %v4689_v58  ;;  %v5181_v39 = vadd.f32 %v5180_v48, %v5155_v30 }
 0x302   : > { %v4181_v60 = vadd.f32 %v5179_v16, %v4689_v58  ;;  %v5183_v6 = vadd.f32 %v5182_v42, %v4114_v35 }
 0x303   : > { %v4191_v17 = vmax.f32 %v4183_v51, 0.0  ;;  %v4184_v29 = vadd.f32 %v5181_v39, %v4689_v58 }
 0x304   : > { %v4189_v53 = vmax.f32 %v4181_v60, 0.0  ;;  %v4182_v25 = vadd.f32 %v5183_v6, %v4689_v58 }
 0x305   : > { %4199 = vst [vmem:[%s6306_s7 + $0x10] sm:$0xff] %v4191_v17  ;;  %v4192_v55 = vmax.f32 %v4184_v29, 0.0 }
 0x306   : > { %4197 = vst [vmem:[%s6306_s7] sm:$0xff] %v4189_v53  ;;  %v4190_v56 = vmax.f32 %v4182_v25, 0.0 }
 0x307   : > { %4200 = vst [vmem:[%s6306_s7 + $0x18] sm:$0xff] %v4192_v55 }
 0x308   : > { %4198 = vst [vmem:[%s6306_s7 + $0x8] sm:$0xff] %v4190_v56 }
 0x31c   : > { %v5158_v4 = vpop.f32.mrb[4].mxu1 }
 0x31d   : > { %v5184_v57 = vadd.f32 %v5158_v4, %v4990_v24  ;;  %v4127_v59 = vpop.f32.mrb[5].mxu1 }
 0x31e   : > { %v5185_v20 = vadd.f32 %v4127_v59, %v2453_v31  ;;  %v5159_v61 = vpop.f32.mrb[6].mxu1 }
 0x31f   : > { %v4187_v62 = vadd.f32 %v5184_v57, %v4689_v58  ;;  %v5186_v63 = vadd.f32 %v5159_v61, %v4991_v34  ;;  %v4130_v0 = vpop.f32.mrb[7].mxu1 }
 0x320   : > { %v4185_v1 = vadd.f32 %v5185_v20, %v4689_v58  ;;  %v5187_v5 = vadd.f32 %v4130_v0, %v2456_v26 }
 0x321   : > { %v4195_v36 = vmax.f32 %v4187_v62, 0.0  ;;  %v4188_v49 = vadd.f32 %v5186_v63, %v4689_v58 }
 0x322   : > { %v4193_v50 = vmax.f32 %v4185_v1, 0.0  ;;  %v4186_v33 = vadd.f32 %v5187_v5, %v4689_v58 }
 0x323   : > { %4203 = vst [vmem:[%s6306_s7 + $0x30] sm:$0xff] %v4195_v36  ;;  %v4196_v7 = vmax.f32 %v4188_v49, 0.0 }
 0x324   : > { %4201 = vst [vmem:[%s6306_s7 + $0x20] sm:$0xff] %v4193_v50  ;;  %v4194_v10 = vmax.f32 %v4186_v33, 0.0 }
 0x325   : > { %4204 = vst [vmem:[%s6306_s7 + $0x38] sm:$0xff] %v4196_v7 }
 0x326   : > { %4202 = vst [vmem:[%s6306_s7 + $0x28] sm:$0xff] %v4194_v10 }
 0x327 PF: > { %s15_s18 = sadd.s32 1, %s5437_s18  }
 0x328   : > { %p12_p4 = scmp.ge.s32.totalorder %s15_s18, 4  }
 0x32a   :  { %14 = sbr.rel (!%p12_p4) target bundleno = 1 (0x1), region = 94 }

</bundles_post_ra>
